<compile_context>
chip_gen: v6e
topology: v6e:2x2x1
jax: 0.10.0
libtpu: 0.0.40
codegen_flags: <defaults>
</compile_context>

<pallas_src>
import functools

import jax
import jax.numpy as jnp
from jax.experimental import pallas as pl
from jax.experimental.pallas import tpu as pltpu


# ---------------------------------------------------------------------------
# Kernel 1: LoRA weight merge   W_eff = W + alpha/rank * (A @ B)   (per tap)
# ---------------------------------------------------------------------------
def _lora_merge_kernel(w_ref, bt_ref, at_ref, out_ref, *, scale, k3):
    # w_ref : (K3, Cin, Cout_pad) f32   base conv weight, channels-last taps
    # bt_ref: (K3, Cin, r)        f32   delta_weight_B^T per tap
    # at_ref: (K3, r,  Cout_pad)  f32   delta_weight_A^T per tap
    # out   : (K3, Cin, Cout_pad) f32
    for k in range(k3):                       # K3 is small & static -> unrolled
        delta = jnp.dot(bt_ref[k], at_ref[k], preferred_element_type=jnp.float32)
        out_ref[k] = w_ref[k] + scale * delta


# ---------------------------------------------------------------------------
# Kernel 2: conv3d as accumulated matmuls over temporal taps
# ---------------------------------------------------------------------------
def _conv_tap_kernel(x_ref, w_ref, b_ref, o_ref, *,
                     kH, kW, th_out, Wo, sh, sw, dh, dw):
    # grid = (N, To, H-bands, Cout-tiles, kT); kT (temporal tap) is the reduction.
    #   x_ref : (TH_in, Wp, Cin)      one padded input band at t_in = to*st + kt*dt
    #   w_ref : (kT, kH*kW*Cin, TN)   merged weight, fully VMEM resident
    #   b_ref : (1, TN)               effective bias (f32, Cout padded to 128)
    #   o_ref : (TH_out*Wo, TN) f32   output tile, used directly as accumulator
    kt = pl.program_id(4)
    xb = x_ref[...]
    cin = xb.shape[-1]

    # im2col fold: one MXU matmul with K = kH*kW*Cin instead of kH*kW tiny dots.
    cols = []
    for kh in range(kH):
        for kw in range(kW):
            sl = xb[kh * dh: kh * dh + (th_out - 1) * sh + 1: sh,
                    kw * dw: kw * dw + (Wo - 1) * sw + 1: sw, :]   # (TH_out, Wo, Cin)
            cols.append(sl.reshape(th_out * Wo, cin))
    patch = cols[0] if len(cols) == 1 else jnp.concatenate(cols, axis=-1)

    contrib = jnp.dot(patch, w_ref[kt], preferred_element_type=jnp.float32)

    @pl.when(kt == 0)
    def _():
        o_ref[...] = contrib + b_ref[...]

    @pl.when(kt > 0)
    def _():
        o_ref[...] += contrib


# ---------------------------------------------------------------------------
# Wrappers
# ---------------------------------------------------------------------------
def merge_effective_weight(base_w, A, B, alpha, rank, cout_pad):
    """Return W + alpha/rank * (A@B)^perm in layout (kT, kH*kW*Cin, Cout_pad), f32."""
    Cout, Cin, kT, kH, kW = base_w.shape
    r = A.shape[-1]
    K3 = kT * kH * kW
    pad_c = cout_pad - Cout

    # Parameter-layout glue (reshape/transpose/pad only); the merge matmul is Pallas.
    w_taps = jnp.transpose(base_w, (2, 3, 4, 1, 0)).reshape(K3, Cin, Cout)
    w_taps = jnp.pad(w_taps, ((0, 0), (0, 0), (0, pad_c))).astype(jnp.float32)
    bt = jnp.transpose(B.reshape(K3, r, Cin), (0, 2, 1)).astype(jnp.float32)   # (K3,Cin,r)
    at = jnp.transpose(A.reshape(K3, Cout, r), (0, 2, 1))                      # (K3,r,Cout)
    at = jnp.pad(at, ((0, 0), (0, 0), (0, pad_c))).astype(jnp.float32)
    scale = float(alpha) / float(rank)

    merged = pl.pallas_call(
        functools.partial(_lora_merge_kernel, scale=scale, k3=K3),
        out_shape=jax.ShapeDtypeStruct((K3, Cin, cout_pad), jnp.float32),
    )(w_taps, bt, at)
    return merged.reshape(kT, kH * kW * Cin, cout_pad)


def _conv3d_from_taps(x, w_merged, bias_pad, kT, kH, kW, stride, padding, dilation,
                      tile_rows=None, compute_dtype=None):
    """conv3d(x, W_eff) + b, W_eff in (kT, kH*kW*Cin, Cout_pad) layout.

    Returns (N, Cout_pad, To, Ho, Wo) in float32.
    """
    N, Cin, T, H, W = x.shape
    st, sh, sw = stride
    pt, ph, pw = padding
    dt, dh, dw = dilation
    To = (T + 2 * pt - dt * (kT - 1) - 1) // st + 1
    Ho = (H + 2 * ph - dh * (kH - 1) - 1) // sh + 1
    Wo = (W + 2 * pw - dw * (kW - 1) - 1) // sw + 1
    kT_, khwc, cout_pad = w_merged.shape
    assert kT_ == kT and khwc == kH * kW * Cin

    # ---- tile sizes --------------------------------------------------------
    if tile_rows is None:
        # keep the per-step output tile (P_t x TN) around a few hundred rows
        tile_rows = max(1, min(Ho, max(1, 512 // max(Wo, 1))))
    th_out = int(tile_rows)                      # output rows per H band
    n_hb = -(-Ho // th_out)                      # ceil
    ho_pad = n_hb * th_out
    th_in = (th_out - 1) * sh + (kH - 1) * dh + 1

    if cout_pad <= 256:
        tn = cout_pad
    elif cout_pad % 256 == 0:
        tn = 256
    else:
        tn = 128
    n_j = cout_pad // tn

    # ---- data-layout glue (plain JAX, fused under jit): pad + H bands ------
    x_cl = jnp.transpose(x, (0, 2, 3, 4, 1))                     # (N,T,H,W,Cin)
    hp_need = (ho_pad - 1) * sh + (kH - 1) * dh + 1
    extra_h = max(0, hp_need - (H + 2 * ph))
    x_pad = jnp.pad(x_cl, ((0, 0), (pt, pt), (ph, ph + extra_h), (pw, pw), (0, 0)))
    Wp = x_pad.shape[3]
    # Overlapping H bands: only a (kH-1)*dh halo is duplicated per band in HBM
    # (instead of a K3x im2col copy of the whole input).
    bands = [jax.lax.slice_in_dim(x_pad, b * th_out * sh, b * th_out * sh + th_in, axis=2)
             for b in range(n_hb)]
    x_bands = jnp.stack(bands, axis=2)                           # (N,Tp,nH,TH_in,Wp,Cin)

    if compute_dtype is None:
        compute_dtype = x.dtype
    x_bands = x_bands.astype(compute_dtype)
    w_merged = w_merged.astype(compute_dtype)

    p_t = th_out * Wo
    kernel = functools.partial(_conv_tap_kernel, kH=kH, kW=kW, th_out=th_out, Wo=Wo,
                               sh=sh, sw=sw, dh=dh, dw=dw)

    out = pl.pallas_call(
        kernel,
        out_shape=jax.ShapeDtypeStruct((N, To, n_hb, p_t, cout_pad), jnp.float32),
        grid=(N, To, n_hb, n_j, kT),
        in_specs=[
            # shifted input band: t_in = to*st + kt*dt, fetched straight from
            # the single padded copy (no pre-shifted HBM copies).
            pl.BlockSpec((None, None, None, th_in, Wp, Cin),
                         lambda n, to, hb, j, kt: (n, to * st + kt * dt, hb, 0, 0, 0)),
            # merged weight: constant index across (n, to, hb, kt) -> DMA'd once
            # per Cout tile and kept VMEM-resident.
            pl.BlockSpec((kT, khwc, tn),
                         lambda n, to, hb, j, kt: (0, 0, j)),
            pl.BlockSpec((1, tn),
                         lambda n, to, hb, j, kt: (0, j)),
        ],
        out_specs=pl.BlockSpec((None, None, None, p_t, tn),
                               lambda n, to, hb, j, kt: (n, to, hb, 0, j)),
        compiler_params=pltpu.CompilerParams(
            dimension_semantics=("parallel", "parallel", "parallel", "parallel",
                                 "arbitrary"),
            vmem_limit_bytes=48 * 1024 * 1024),
    )(x_bands, w_merged, bias_pad)

    out = out.reshape(N, To, n_hb * th_out, Wo, cout_pad)
    out = out[:, :, :Ho, :, :]                                   # drop H padding
    return jnp.transpose(out, (0, 4, 1, 2, 3))                   # (N, Cout_pad, To, Ho, Wo)


def lora_conv3d_forward(x, base_w, base_b, A, B, delta_bias, *,
                        alpha, rank, beta,
                        stride=(1, 1, 1), padding=(1, 1, 1), dilation=(1, 1, 1),
                        groups=1, adapter_enabled=True,
                        tile_rows=None, compute_dtype=None):
    """Pallas equivalent of LoRAConv3d.forward (NCDHW in / NCDHW out)."""
    assert groups == 1  # TODO(synk): grouped conv3d not implemented in the Pallas kernel
    Cout, Cin, kT, kH, kW = base_w.shape
    cout_pad = ((Cout + 127) // 128) * 128       # lane-dense (unmasked) output stores

    if adapter_enabled:
        w_merged = merge_effective_weight(base_w, A, B, alpha, rank, cout_pad)
        if base_b is not None and delta_bias is not None:
            eff_b = base_b.astype(jnp.float32) + beta * delta_bias.astype(jnp.float32)
        elif base_b is not None:
            eff_b = base_b.astype(jnp.float32)
        elif delta_bias is not None:
            eff_b = beta * delta_bias.astype(jnp.float32)
        else:
            eff_b = jnp.zeros((Cout,), jnp.float32)
    else:
        K3 = kT * kH * kW
        w_taps = jnp.transpose(base_w, (2, 3, 4, 1, 0)).reshape(K3, Cin, Cout)
        w_taps = jnp.pad(w_taps, ((0, 0), (0, 0), (0, cout_pad - Cout))).astype(jnp.float32)
        w_merged = w_taps.reshape(kT, kH * kW * Cin, cout_pad)
        eff_b = (base_b.astype(jnp.float32) if base_b is not None
                 else jnp.zeros((Cout,), jnp.float32))

    bias_pad = jnp.pad(eff_b, (0, cout_pad - Cout)).reshape(1, cout_pad)

    out = _conv3d_from_taps(x, w_merged, bias_pad, kT, kH, kW,
                            stride, padding, dilation,
                            tile_rows=tile_rows, compute_dtype=compute_dtype)
    return out[:, :Cout].astype(x.dtype)


# ---------------------------------------------------------------------------
# Pure-JAX reference (correctness check only)
# ---------------------------------------------------------------------------
def reference_forward(x, base_w, base_b, A, B, alpha, rank,
                      delta_bias, beta, stride, padding, dilation,
                      adapter_enabled=True):
    if adapter_enabled:
        delta = jnp.einsum('tuvor,tuvri->tuvoi', A, B)           # (kT,kH,kW,Cout,Cin)
        eff_w = base_w + (alpha / rank) * jnp.transpose(delta, (3, 4, 0, 1, 2))
        eff_b = base_b + beta * delta_bias
    else:
        eff_w, eff_b = base_w, base_b
    out = jax.lax.conv_general_dilated(
        x, eff_w, window_strides=stride,
        padding=[(p, p) for p in padding],
        rhs_dilation=dilation,
        dimension_numbers=('NCDHW', 'OIDHW', 'NCDHW'),
        precision=jax.lax.Precision.HIGHEST)
    return out + eff_b[None, :, None, None, None]


# ---------------------------------------------------------------------------
if __name__ == "__main__":
    key = jax.random.PRNGKey(0)
    k1, k2, k3, k4, k5, k6 = jax.random.split(key, 6)

    # Small, nn.Conv3d-consistent shapes.
    N, Cin, Cout = 2, 4, 8
    T, H, W = 6, 16, 16
    kT = kH = kW = 3
    rank = 4
    alpha = 8.0
    beta = 0.5
    stride = (1, 1, 1)
    padding = (1, 1, 1)
    dilation = (1, 1, 1)

    x = jax.random.normal(k1, (N, Cin, T, H, W), jnp.float32)
    base_w = 0.1 * jax.random.normal(k2, (Cout, Cin, kT, kH, kW), jnp.float32)
    base_b = 0.1 * jax.random.normal(k3, (Cout,), jnp.float32)
    # Deterministic stand-in for the kaiming_uniform_ init of the LoRA factors.
    A = jax.random.uniform(k4, (kT, kH, kW, Cout, rank), jnp.float32, -0.5, 0.5)
    B = jax.random.uniform(k5, (kT, kH, kW, rank, Cin), jnp.float32, -0.5, 0.5)
    delta_bias = 0.1 * jax.random.normal(k6, (Cout,), jnp.float32)

    @jax.jit
    def fwd(x, base_w, base_b, A, B, delta_bias):
        # jitted as one graph so the pad / band-stack glue fuses with the kernel.
        return lora_conv3d_forward(x, base_w, base_b, A, B, delta_bias,
                                   alpha=alpha, rank=rank, beta=beta,
                                   stride=stride, padding=padding, dilation=dilation,
                                   groups=1, adapter_enabled=True,
                                   tile_rows=6)   # exercises H-band tiling + padding

    out = jax.block_until_ready(fwd(x, base_w, base_b, A, B, delta_bias))

    ref = reference_forward(x, base_w, base_b, A, B, alpha, rank,
                            delta_bias, beta, stride, padding, dilation,
                            adapter_enabled=True)

    assert out.shape == (N, Cout, T, H, W), out.shape
    max_err = float(jnp.max(jnp.abs(out - ref)))
    assert max_err < 1e-3, f"max abs error {max_err}"
    print("KERNEL_OK")
</pallas_src>

<mosaic_0001>
module attributes {stable_mosaic.version = 11 : i64} {
  func.func @_lora_merge_kernel(%arg0: memref<27x4x128xf32, #tpu.memory_space<vmem>>, %arg1: memref<27x4x4xf32, #tpu.memory_space<vmem>>, %arg2: memref<27x4x128xf32, #tpu.memory_space<vmem>>, %arg3: memref<27x4x128xf32, #tpu.memory_space<vmem>>) attributes {dimension_semantics = [], scalar_prefetch = 0 : i64, scratch_operands = 0 : i64, tpu.core_type = #tpu.core_type<tc>} {
    %c0 = arith.constant 0 : index
    %c0_0 = arith.constant 0 : index
    %c0_1 = arith.constant 0 : index
    %0 = vector.load %arg1[%c0, %c0_0, %c0_1] : memref<27x4x4xf32, #tpu.memory_space<vmem>>, vector<1x4x4xf32>
    %1 = vector.shape_cast %0 : vector<1x4x4xf32> to vector<4x4xf32>
    %c0_2 = arith.constant 0 : index
    %c0_3 = arith.constant 0 : index
    %c0_4 = arith.constant 0 : index
    %2 = vector.load %arg2[%c0_2, %c0_3, %c0_4] : memref<27x4x128xf32, #tpu.memory_space<vmem>>, vector<1x4x128xf32>
    %3 = vector.shape_cast %2 : vector<1x4x128xf32> to vector<4x128xf32>
    %cst = arith.constant dense<0.000000e+00> : vector<4x128xf32>
    %4 = tpu.matmul %1, %3, %cst {dimension_numbers = #tpu.dot_dimension_numbers<[1], [0], [0], [1], [0, 0, 1, 1], [], []>} : vector<4x4xf32>, vector<4x128xf32>, vector<4x128xf32> -> vector<4x128xf32>
    %c0_5 = arith.constant 0 : index
    %c0_6 = arith.constant 0 : index
    %c0_7 = arith.constant 0 : index
    %5 = vector.load %arg0[%c0_5, %c0_6, %c0_7] : memref<27x4x128xf32, #tpu.memory_space<vmem>>, vector<1x4x128xf32>
    %6 = vector.shape_cast %5 : vector<1x4x128xf32> to vector<4x128xf32>
    %cst_8 = arith.constant 2.000000e+00 : f32
    %7 = vector.broadcast %cst_8 : f32 to vector<4x128xf32>
    %8 = arith.mulf %7, %4 : vector<4x128xf32>
    %9 = arith.addf %6, %8 : vector<4x128xf32>
    %c0_9 = arith.constant 0 : index
    %c0_10 = arith.constant 0 : index
    %c0_11 = arith.constant 0 : index
    %10 = vector.load %arg3[%c0_9, %c0_10, %c0_11] : memref<27x4x128xf32, #tpu.memory_space<vmem>>, vector<1x4x128xf32>
    %11 = vector.shape_cast %10 : vector<1x4x128xf32> to vector<4x128xf32>
    %12 = vector.shape_cast %9 : vector<4x128xf32> to vector<1x4x128xf32>
    tpu.vector_store %arg3[%c0_9, %c0_10, %c0_11], %12 {strides = array<i32>} : memref<27x4x128xf32, #tpu.memory_space<vmem>>, vector<1x4x128xf32>,
    %c1 = arith.constant 1 : index
    %c0_12 = arith.constant 0 : index
    %c0_13 = arith.constant 0 : index
    %13 = vector.load %arg1[%c1, %c0_12, %c0_13] : memref<27x4x4xf32, #tpu.memory_space<vmem>>, vector<1x4x4xf32>
    %14 = vector.shape_cast %13 : vector<1x4x4xf32> to vector<4x4xf32>
    %c1_14 = arith.constant 1 : index
    %c0_15 = arith.constant 0 : index
    %c0_16 = arith.constant 0 : index
    %15 = vector.load %arg2[%c1_14, %c0_15, %c0_16] : memref<27x4x128xf32, #tpu.memory_space<vmem>>, vector<1x4x128xf32>
    %16 = vector.shape_cast %15 : vector<1x4x128xf32> to vector<4x128xf32>
    %cst_17 = arith.constant dense<0.000000e+00> : vector<4x128xf32>
    %17 = tpu.matmul %14, %16, %cst_17 {dimension_numbers = #tpu.dot_dimension_numbers<[1], [0], [0], [1], [0, 0, 1, 1], [], []>} : vector<4x4xf32>, vector<4x128xf32>, vector<4x128xf32> -> vector<4x128xf32>
    %c1_18 = arith.constant 1 : index
    %c0_19 = arith.constant 0 : index
    %c0_20 = arith.constant 0 : index
    %18 = vector.load %arg0[%c1_18, %c0_19, %c0_20] : memref<27x4x128xf32, #tpu.memory_space<vmem>>, vector<1x4x128xf32>
    %19 = vector.shape_cast %18 : vector<1x4x128xf32> to vector<4x128xf32>
    %cst_21 = arith.constant 2.000000e+00 : f32
    %20 = vector.broadcast %cst_21 : f32 to vector<4x128xf32>
    %21 = arith.mulf %20, %17 : vector<4x128xf32>
    %22 = arith.addf %19, %21 : vector<4x128xf32>
    %c1_22 = arith.constant 1 : index
    %c0_23 = arith.constant 0 : index
    %c0_24 = arith.constant 0 : index
    %23 = vector.load %arg3[%c1_22, %c0_23, %c0_24] : memref<27x4x128xf32, #tpu.memory_space<vmem>>, vector<1x4x128xf32>
    %24 = vector.shape_cast %23 : vector<1x4x128xf32> to vector<4x128xf32>
    %25 = vector.shape_cast %22 : vector<4x128xf32> to vector<1x4x128xf32>
    tpu.vector_store %arg3[%c1_22, %c0_23, %c0_24], %25 {strides = array<i32>} : memref<27x4x128xf32, #tpu.memory_space<vmem>>, vector<1x4x128xf32>,
    %c2 = arith.constant 2 : index
    %c0_25 = arith.constant 0 : index
    %c0_26 = arith.constant 0 : index
    %26 = vector.load %arg1[%c2, %c0_25, %c0_26] : memref<27x4x4xf32, #tpu.memory_space<vmem>>, vector<1x4x4xf32>
    %27 = vector.shape_cast %26 : vector<1x4x4xf32> to vector<4x4xf32>
    %c2_27 = arith.constant 2 : index
    %c0_28 = arith.constant 0 : index
    %c0_29 = arith.constant 0 : index
    %28 = vector.load %arg2[%c2_27, %c0_28, %c0_29] : memref<27x4x128xf32, #tpu.memory_space<vmem>>, vector<1x4x128xf32>
    %29 = vector.shape_cast %28 : vector<1x4x128xf32> to vector<4x128xf32>
    %cst_30 = arith.constant dense<0.000000e+00> : vector<4x128xf32>
    %30 = tpu.matmul %27, %29, %cst_30 {dimension_numbers = #tpu.dot_dimension_numbers<[1], [0], [0], [1], [0, 0, 1, 1], [], []>} : vector<4x4xf32>, vector<4x128xf32>, vector<4x128xf32> -> vector<4x128xf32>
    %c2_31 = arith.constant 2 : index
    %c0_32 = arith.constant 0 : index
    %c0_33 = arith.constant 0 : index
    %31 = vector.load %arg0[%c2_31, %c0_32, %c0_33] : memref<27x4x128xf32, #tpu.memory_space<vmem>>, vector<1x4x128xf32>
    %32 = vector.shape_cast %31 : vector<1x4x128xf32> to vector<4x128xf32>
    %cst_34 = arith.constant 2.000000e+00 : f32
    %33 = vector.broadcast %cst_34 : f32 to vector<4x128xf32>
    %34 = arith.mulf %33, %30 : vector<4x128xf32>
    %35 = arith.addf %32, %34 : vector<4x128xf32>
    %c2_35 = arith.constant 2 : index
    %c0_36 = arith.constant 0 : index
    %c0_37 = arith.constant 0 : index
    %36 = vector.load %arg3[%c2_35, %c0_36, %c0_37] : memref<27x4x128xf32, #tpu.memory_space<vmem>>, vector<1x4x128xf32>
    %37 = vector.shape_cast %36 : vector<1x4x128xf32> to vector<4x128xf32>
    %38 = vector.shape_cast %35 : vector<4x128xf32> to vector<1x4x128xf32>
    tpu.vector_store %arg3[%c2_35, %c0_36, %c0_37], %38 {strides = array<i32>} : memref<27x4x128xf32, #tpu.memory_space<vmem>>, vector<1x4x128xf32>,
    %c3 = arith.constant 3 : index
    %c0_38 = arith.constant 0 : index
    %c0_39 = arith.constant 0 : index
    %39 = vector.load %arg1[%c3, %c0_38, %c0_39] : memref<27x4x4xf32, #tpu.memory_space<vmem>>, vector<1x4x4xf32>
    %40 = vector.shape_cast %39 : vector<1x4x4xf32> to vector<4x4xf32>
    %c3_40 = arith.constant 3 : index
    %c0_41 = arith.constant 0 : index
    %c0_42 = arith.constant 0 : index
    %41 = vector.load %arg2[%c3_40, %c0_41, %c0_42] : memref<27x4x128xf32, #tpu.memory_space<vmem>>, vector<1x4x128xf32>
    %42 = vector.shape_cast %41 : vector<1x4x128xf32> to vector<4x128xf32>
    %cst_43 = arith.constant dense<0.000000e+00> : vector<4x128xf32>
    %43 = tpu.matmul %40, %42, %cst_43 {dimension_numbers = #tpu.dot_dimension_numbers<[1], [0], [0], [1], [0, 0, 1, 1], [], []>} : vector<4x4xf32>, vector<4x128xf32>, vector<4x128xf32> -> vector<4x128xf32>
    %c3_44 = arith.constant 3 : index
    %c0_45 = arith.constant 0 : index
    %c0_46 = arith.constant 0 : index
    %44 = vector.load %arg0[%c3_44, %c0_45, %c0_46] : memref<27x4x128xf32, #tpu.memory_space<vmem>>, vector<1x4x128xf32>
    %45 = vector.shape_cast %44 : vector<1x4x128xf32> to vector<4x128xf32>
    %cst_47 = arith.constant 2.000000e+00 : f32
    %46 = vector.broadcast %cst_47 : f32 to vector<4x128xf32>
    %47 = arith.mulf %46, %43 : vector<4x128xf32>
    %48 = arith.addf %45, %47 : vector<4x128xf32>
    %c3_48 = arith.constant 3 : index
    %c0_49 = arith.constant 0 : index
    %c0_50 = arith.constant 0 : index
    %49 = vector.load %arg3[%c3_48, %c0_49, %c0_50] : memref<27x4x128xf32, #tpu.memory_space<vmem>>, vector<1x4x128xf32>
    %50 = vector.shape_cast %49 : vector<1x4x128xf32> to vector<4x128xf32>
    %51 = vector.shape_cast %48 : vector<4x128xf32> to vector<1x4x128xf32>
    tpu.vector_store %arg3[%c3_48, %c0_49, %c0_50], %51 {strides = array<i32>} : memref<27x4x128xf32, #tpu.memory_space<vmem>>, vector<1x4x128xf32>,
    %c4 = arith.constant 4 : index
    %c0_51 = arith.constant 0 : index
    %c0_52 = arith.constant 0 : index
    %52 = vector.load %arg1[%c4, %c0_51, %c0_52] : memref<27x4x4xf32, #tpu.memory_space<vmem>>, vector<1x4x4xf32>
    %53 = vector.shape_cast %52 : vector<1x4x4xf32> to vector<4x4xf32>
    %c4_53 = arith.constant 4 : index
    %c0_54 = arith.constant 0 : index
    %c0_55 = arith.constant 0 : index
    %54 = vector.load %arg2[%c4_53, %c0_54, %c0_55] : memref<27x4x128xf32, #tpu.memory_space<vmem>>, vector<1x4x128xf32>
    %55 = vector.shape_cast %54 : vector<1x4x128xf32> to vector<4x128xf32>
    %cst_56 = arith.constant dense<0.000000e+00> : vector<4x128xf32>
    %56 = tpu.matmul %53, %55, %cst_56 {dimension_numbers = #tpu.dot_dimension_numbers<[1], [0], [0], [1], [0, 0, 1, 1], [], []>} : vector<4x4xf32>, vector<4x128xf32>, vector<4x128xf32> -> vector<4x128xf32>
    %c4_57 = arith.constant 4 : index
    %c0_58 = arith.constant 0 : index
    %c0_59 = arith.constant 0 : index
    %57 = vector.load %arg0[%c4_57, %c0_58, %c0_59] : memref<27x4x128xf32, #tpu.memory_space<vmem>>, vector<1x4x128xf32>
    %58 = vector.shape_cast %57 : vector<1x4x128xf32> to vector<4x128xf32>
    %cst_60 = arith.constant 2.000000e+00 : f32
    %59 = vector.broadcast %cst_60 : f32 to vector<4x128xf32>
    %60 = arith.mulf %59, %56 : vector<4x128xf32>
    %61 = arith.addf %58, %60 : vector<4x128xf32>
    %c4_61 = arith.constant 4 : index
    %c0_62 = arith.constant 0 : index
    %c0_63 = arith.constant 0 : index
    %62 = vector.load %arg3[%c4_61, %c0_62, %c0_63] : memref<27x4x128xf32, #tpu.memory_space<vmem>>, vector<1x4x128xf32>
    %63 = vector.shape_cast %62 : vector<1x4x128xf32> to vector<4x128xf32>
    %64 = vector.shape_cast %61 : vector<4x128xf32> to vector<1x4x128xf32>
    tpu.vector_store %arg3[%c4_61, %c0_62, %c0_63], %64 {strides = array<i32>} : memref<27x4x128xf32, #tpu.memory_space<vmem>>, vector<1x4x128xf32>,
    %c5 = arith.constant 5 : index
    %c0_64 = arith.constant 0 : index
    %c0_65 = arith.constant 0 : index
    %65 = vector.load %arg1[%c5, %c0_64, %c0_65] : memref<27x4x4xf32, #tpu.memory_space<vmem>>, vector<1x4x4xf32>
    %66 = vector.shape_cast %65 : vector<1x4x4xf32> to vector<4x4xf32>
    %c5_66 = arith.constant 5 : index
    %c0_67 = arith.constant 0 : index
    %c0_68 = arith.constant 0 : index
    %67 = vector.load %arg2[%c5_66, %c0_67, %c0_68] : memref<27x4x128xf32, #tpu.memory_space<vmem>>, vector<1x4x128xf32>
    %68 = vector.shape_cast %67 : vector<1x4x128xf32> to vector<4x128xf32>
    %cst_69 = arith.constant dense<0.000000e+00> : vector<4x128xf32>
    %69 = tpu.matmul %66, %68, %cst_69 {dimension_numbers = #tpu.dot_dimension_numbers<[1], [0], [0], [1], [0, 0, 1, 1], [], []>} : vector<4x4xf32>, vector<4x128xf32>, vector<4x128xf32> -> vector<4x128xf32>
    %c5_70 = arith.constant 5 : index
    %c0_71 = arith.constant 0 : index
    %c0_72 = arith.constant 0 : index
    %70 = vector.load %arg0[%c5_70, %c0_71, %c0_72] : memref<27x4x128xf32, #tpu.memory_space<vmem>>, vector<1x4x128xf32>
    %71 = vector.shape_cast %70 : vector<1x4x128xf32> to vector<4x128xf32>
    %cst_73 = arith.constant 2.000000e+00 : f32
    %72 = vector.broadcast %cst_73 : f32 to vector<4x128xf32>
    %73 = arith.mulf %72, %69 : vector<4x128xf32>
    %74 = arith.addf %71, %73 : vector<4x128xf32>
    %c5_74 = arith.constant 5 : index
    %c0_75 = arith.constant 0 : index
    %c0_76 = arith.constant 0 : index
    %75 = vector.load %arg3[%c5_74, %c0_75, %c0_76] : memref<27x4x128xf32, #tpu.memory_space<vmem>>, vector<1x4x128xf32>
    %76 = vector.shape_cast %75 : vector<1x4x128xf32> to vector<4x128xf32>
    %77 = vector.shape_cast %74 : vector<4x128xf32> to vector<1x4x128xf32>
    tpu.vector_store %arg3[%c5_74, %c0_75, %c0_76], %77 {strides = array<i32>} : memref<27x4x128xf32, #tpu.memory_space<vmem>>, vector<1x4x128xf32>,
    %c6 = arith.constant 6 : index
    %c0_77 = arith.constant 0 : index
    %c0_78 = arith.constant 0 : index
    %78 = vector.load %arg1[%c6, %c0_77, %c0_78] : memref<27x4x4xf32, #tpu.memory_space<vmem>>, vector<1x4x4xf32>
    %79 = vector.shape_cast %78 : vector<1x4x4xf32> to vector<4x4xf32>
    %c6_79 = arith.constant 6 : index
    %c0_80 = arith.constant 0 : index
    %c0_81 = arith.constant 0 : index
    %80 = vector.load %arg2[%c6_79, %c0_80, %c0_81] : memref<27x4x128xf32, #tpu.memory_space<vmem>>, vector<1x4x128xf32>
    %81 = vector.shape_cast %80 : vector<1x4x128xf32> to vector<4x128xf32>
    %cst_82 = arith.constant dense<0.000000e+00> : vector<4x128xf32>
    %82 = tpu.matmul %79, %81, %cst_82 {dimension_numbers = #tpu.dot_dimension_numbers<[1], [0], [0], [1], [0, 0, 1, 1], [], []>} : vector<4x4xf32>, vector<4x128xf32>, vector<4x128xf32> -> vector<4x128xf32>
    %c6_83 = arith.constant 6 : index
    %c0_84 = arith.constant 0 : index
    %c0_85 = arith.constant 0 : index
    %83 = vector.load %arg0[%c6_83, %c0_84, %c0_85] : memref<27x4x128xf32, #tpu.memory_space<vmem>>, vector<1x4x128xf32>
    %84 = vector.shape_cast %83 : vector<1x4x128xf32> to vector<4x128xf32>
    %cst_86 = arith.constant 2.000000e+00 : f32
    %85 = vector.broadcast %cst_86 : f32 to vector<4x128xf32>
    %86 = arith.mulf %85, %82 : vector<4x128xf32>
    %87 = arith.addf %84, %86 : vector<4x128xf32>
    %c6_87 = arith.constant 6 : index
    %c0_88 = arith.constant 0 : index
    %c0_89 = arith.constant 0 : index
    %88 = vector.load %arg3[%c6_87, %c0_88, %c0_89] : memref<27x4x128xf32, #tpu.memory_space<vmem>>, vector<1x4x128xf32>
    %89 = vector.shape_cast %88 : vector<1x4x128xf32> to vector<4x128xf32>
    %90 = vector.shape_cast %87 : vector<4x128xf32> to vector<1x4x128xf32>
    tpu.vector_store %arg3[%c6_87, %c0_88, %c0_89], %90 {strides = array<i32>} : memref<27x4x128xf32, #tpu.memory_space<vmem>>, vector<1x4x128xf32>,
    %c7 = arith.constant 7 : index
    %c0_90 = arith.constant 0 : index
    %c0_91 = arith.constant 0 : index
    %91 = vector.load %arg1[%c7, %c0_90, %c0_91] : memref<27x4x4xf32, #tpu.memory_space<vmem>>, vector<1x4x4xf32>
    %92 = vector.shape_cast %91 : vector<1x4x4xf32> to vector<4x4xf32>
    %c7_92 = arith.constant 7 : index
    %c0_93 = arith.constant 0 : index
    %c0_94 = arith.constant 0 : index
    %93 = vector.load %arg2[%c7_92, %c0_93, %c0_94] : memref<27x4x128xf32, #tpu.memory_space<vmem>>, vector<1x4x128xf32>
    %94 = vector.shape_cast %93 : vector<1x4x128xf32> to vector<4x128xf32>
    %cst_95 = arith.constant dense<0.000000e+00> : vector<4x128xf32>
    %95 = tpu.matmul %92, %94, %cst_95 {dimension_numbers = #tpu.dot_dimension_numbers<[1], [0], [0], [1], [0, 0, 1, 1], [], []>} : vector<4x4xf32>, vector<4x128xf32>, vector<4x128xf32> -> vector<4x128xf32>
    %c7_96 = arith.constant 7 : index
    %c0_97 = arith.constant 0 : index
    %c0_98 = arith.constant 0 : index
    %96 = vector.load %arg0[%c7_96, %c0_97, %c0_98] : memref<27x4x128xf32, #tpu.memory_space<vmem>>, vector<1x4x128xf32>
    %97 = vector.shape_cast %96 : vector<1x4x128xf32> to vector<4x128xf32>
    %cst_99 = arith.constant 2.000000e+00 : f32
    %98 = vector.broadcast %cst_99 : f32 to vector<4x128xf32>
    %99 = arith.mulf %98, %95 : vector<4x128xf32>
    %100 = arith.addf %97, %99 : vector<4x128xf32>
    %c7_100 = arith.constant 7 : index
    %c0_101 = arith.constant 0 : index
    %c0_102 = arith.constant 0 : index
    %101 = vector.load %arg3[%c7_100, %c0_101, %c0_102] : memref<27x4x128xf32, #tpu.memory_space<vmem>>, vector<1x4x128xf32>
    %102 = vector.shape_cast %101 : vector<1x4x128xf32> to vector<4x128xf32>
    %103 = vector.shape_cast %100 : vector<4x128xf32> to vector<1x4x128xf32>
    tpu.vector_store %arg3[%c7_100, %c0_101, %c0_102], %103 {strides = array<i32>} : memref<27x4x128xf32, #tpu.memory_space<vmem>>, vector<1x4x128xf32>,
    %c8 = arith.constant 8 : index
    %c0_103 = arith.constant 0 : index
    %c0_104 = arith.constant 0 : index
    %104 = vector.load %arg1[%c8, %c0_103, %c0_104] : memref<27x4x4xf32, #tpu.memory_space<vmem>>, vector<1x4x4xf32>
    %105 = vector.shape_cast %104 : vector<1x4x4xf32> to vector<4x4xf32>
    %c8_105 = arith.constant 8 : index
    %c0_106 = arith.constant 0 : index
    %c0_107 = arith.constant 0 : index
    %106 = vector.load %arg2[%c8_105, %c0_106, %c0_107] : memref<27x4x128xf32, #tpu.memory_space<vmem>>, vector<1x4x128xf32>
    %107 = vector.shape_cast %106 : vector<1x4x128xf32> to vector<4x128xf32>
    %cst_108 = arith.constant dense<0.000000e+00> : vector<4x128xf32>
    %108 = tpu.matmul %105, %107, %cst_108 {dimension_numbers = #tpu.dot_dimension_numbers<[1], [0], [0], [1], [0, 0, 1, 1], [], []>} : vector<4x4xf32>, vector<4x128xf32>, vector<4x128xf32> -> vector<4x128xf32>
    %c8_109 = arith.constant 8 : index
    %c0_110 = arith.constant 0 : index
    %c0_111 = arith.constant 0 : index
    %109 = vector.load %arg0[%c8_109, %c0_110, %c0_111] : memref<27x4x128xf32, #tpu.memory_space<vmem>>, vector<1x4x128xf32>
    %110 = vector.shape_cast %109 : vector<1x4x128xf32> to vector<4x128xf32>
    %cst_112 = arith.constant 2.000000e+00 : f32
    %111 = vector.broadcast %cst_112 : f32 to vector<4x128xf32>
    %112 = arith.mulf %111, %108 : vector<4x128xf32>
    %113 = arith.addf %110, %112 : vector<4x128xf32>
    %c8_113 = arith.constant 8 : index
    %c0_114 = arith.constant 0 : index
    %c0_115 = arith.constant 0 : index
    %114 = vector.load %arg3[%c8_113, %c0_114, %c0_115] : memref<27x4x128xf32, #tpu.memory_space<vmem>>, vector<1x4x128xf32>
    %115 = vector.shape_cast %114 : vector<1x4x128xf32> to vector<4x128xf32>
    %116 = vector.shape_cast %113 : vector<4x128xf32> to vector<1x4x128xf32>
    tpu.vector_store %arg3[%c8_113, %c0_114, %c0_115], %116 {strides = array<i32>} : memref<27x4x128xf32, #tpu.memory_space<vmem>>, vector<1x4x128xf32>,
    %c9 = arith.constant 9 : index
    %c0_116 = arith.constant 0 : index
    %c0_117 = arith.constant 0 : index
    %117 = vector.load %arg1[%c9, %c0_116, %c0_117] : memref<27x4x4xf32, #tpu.memory_space<vmem>>, vector<1x4x4xf32>
    %118 = vector.shape_cast %117 : vector<1x4x4xf32> to vector<4x4xf32>
    %c9_118 = arith.constant 9 : index
    %c0_119 = arith.constant 0 : index
    %c0_120 = arith.constant 0 : index
    %119 = vector.load %arg2[%c9_118, %c0_119, %c0_120] : memref<27x4x128xf32, #tpu.memory_space<vmem>>, vector<1x4x128xf32>
    %120 = vector.shape_cast %119 : vector<1x4x128xf32> to vector<4x128xf32>
    %cst_121 = arith.constant dense<0.000000e+00> : vector<4x128xf32>
    %121 = tpu.matmul %118, %120, %cst_121 {dimension_numbers = #tpu.dot_dimension_numbers<[1], [0], [0], [1], [0, 0, 1, 1], [], []>} : vector<4x4xf32>, vector<4x128xf32>, vector<4x128xf32> -> vector<4x128xf32>
    %c9_122 = arith.constant 9 : index
    %c0_123 = arith.constant 0 : index
    %c0_124 = arith.constant 0 : index
    %122 = vector.load %arg0[%c9_122, %c0_123, %c0_124] : memref<27x4x128xf32, #tpu.memory_space<vmem>>, vector<1x4x128xf32>
    %123 = vector.shape_cast %122 : vector<1x4x128xf32> to vector<4x128xf32>
    %cst_125 = arith.constant 2.000000e+00 : f32
    %124 = vector.broadcast %cst_125 : f32 to vector<4x128xf32>
    %125 = arith.mulf %124, %121 : vector<4x128xf32>
    %126 = arith.addf %123, %125 : vector<4x128xf32>
    %c9_126 = arith.constant 9 : index
    %c0_127 = arith.constant 0 : index
    %c0_128 = arith.constant 0 : index
    %127 = vector.load %arg3[%c9_126, %c0_127, %c0_128] : memref<27x4x128xf32, #tpu.memory_space<vmem>>, vector<1x4x128xf32>
    %128 = vector.shape_cast %127 : vector<1x4x128xf32> to vector<4x128xf32>
    %129 = vector.shape_cast %126 : vector<4x128xf32> to vector<1x4x128xf32>
    tpu.vector_store %arg3[%c9_126, %c0_127, %c0_128], %129 {strides = array<i32>} : memref<27x4x128xf32, #tpu.memory_space<vmem>>, vector<1x4x128xf32>,
    %c10 = arith.constant 10 : index
    %c0_129 = arith.constant 0 : index
    %c0_130 = arith.constant 0 : index
    %130 = vector.load %arg1[%c10, %c0_129, %c0_130] : memref<27x4x4xf32, #tpu.memory_space<vmem>>, vector<1x4x4xf32>
    %131 = vector.shape_cast %130 : vector<1x4x4xf32> to vector<4x4xf32>
    %c10_131 = arith.constant 10 : index
    %c0_132 = arith.constant 0 : index
    %c0_133 = arith.constant 0 : index
    %132 = vector.load %arg2[%c10_131, %c0_132, %c0_133] : memref<27x4x128xf32, #tpu.memory_space<vmem>>, vector<1x4x128xf32>
    %133 = vector.shape_cast %132 : vector<1x4x128xf32> to vector<4x128xf32>
    %cst_134 = arith.constant dense<0.000000e+00> : vector<4x128xf32>
    %134 = tpu.matmul %131, %133, %cst_134 {dimension_numbers = #tpu.dot_dimension_numbers<[1], [0], [0], [1], [0, 0, 1, 1], [], []>} : vector<4x4xf32>, vector<4x128xf32>, vector<4x128xf32> -> vector<4x128xf32>
    %c10_135 = arith.constant 10 : index
    %c0_136 = arith.constant 0 : index
    %c0_137 = arith.constant 0 : index
    %135 = vector.load %arg0[%c10_135, %c0_136, %c0_137] : memref<27x4x128xf32, #tpu.memory_space<vmem>>, vector<1x4x128xf32>
    %136 = vector.shape_cast %135 : vector<1x4x128xf32> to vector<4x128xf32>
    %cst_138 = arith.constant 2.000000e+00 : f32
    %137 = vector.broadcast %cst_138 : f32 to vector<4x128xf32>
    %138 = arith.mulf %137, %134 : vector<4x128xf32>
    %139 = arith.addf %136, %138 : vector<4x128xf32>
    %c10_139 = arith.constant 10 : index
    %c0_140 = arith.constant 0 : index
    %c0_141 = arith.constant 0 : index
    %140 = vector.load %arg3[%c10_139, %c0_140, %c0_141] : memref<27x4x128xf32, #tpu.memory_space<vmem>>, vector<1x4x128xf32>
    %141 = vector.shape_cast %140 : vector<1x4x128xf32> to vector<4x128xf32>
    %142 = vector.shape_cast %139 : vector<4x128xf32> to vector<1x4x128xf32>
    tpu.vector_store %arg3[%c10_139, %c0_140, %c0_141], %142 {strides = array<i32>} : memref<27x4x128xf32, #tpu.memory_space<vmem>>, vector<1x4x128xf32>,
    %c11 = arith.constant 11 : index
    %c0_142 = arith.constant 0 : index
    %c0_143 = arith.constant 0 : index
    %143 = vector.load %arg1[%c11, %c0_142, %c0_143] : memref<27x4x4xf32, #tpu.memory_space<vmem>>, vector<1x4x4xf32>
    %144 = vector.shape_cast %143 : vector<1x4x4xf32> to vector<4x4xf32>
    %c11_144 = arith.constant 11 : index
    %c0_145 = arith.constant 0 : index
    %c0_146 = arith.constant 0 : index
    %145 = vector.load %arg2[%c11_144, %c0_145, %c0_146] : memref<27x4x128xf32, #tpu.memory_space<vmem>>, vector<1x4x128xf32>
    %146 = vector.shape_cast %145 : vector<1x4x128xf32> to vector<4x128xf32>
    %cst_147 = arith.constant dense<0.000000e+00> : vector<4x128xf32>
    %147 = tpu.matmul %144, %146, %cst_147 {dimension_numbers = #tpu.dot_dimension_numbers<[1], [0], [0], [1], [0, 0, 1, 1], [], []>} : vector<4x4xf32>, vector<4x128xf32>, vector<4x128xf32> -> vector<4x128xf32>
    %c11_148 = arith.constant 11 : index
    %c0_149 = arith.constant 0 : index
    %c0_150 = arith.constant 0 : index
    %148 = vector.load %arg0[%c11_148, %c0_149, %c0_150] : memref<27x4x128xf32, #tpu.memory_space<vmem>>, vector<1x4x128xf32>
    %149 = vector.shape_cast %148 : vector<1x4x128xf32> to vector<4x128xf32>
    %cst_151 = arith.constant 2.000000e+00 : f32
    %150 = vector.broadcast %cst_151 : f32 to vector<4x128xf32>
    %151 = arith.mulf %150, %147 : vector<4x128xf32>
    %152 = arith.addf %149, %151 : vector<4x128xf32>
    %c11_152 = arith.constant 11 : index
    %c0_153 = arith.constant 0 : index
    %c0_154 = arith.constant 0 : index
    %153 = vector.load %arg3[%c11_152, %c0_153, %c0_154] : memref<27x4x128xf32, #tpu.memory_space<vmem>>, vector<1x4x128xf32>
    %154 = vector.shape_cast %153 : vector<1x4x128xf32> to vector<4x128xf32>
    %155 = vector.shape_cast %152 : vector<4x128xf32> to vector<1x4x128xf32>
    tpu.vector_store %arg3[%c11_152, %c0_153, %c0_154], %155 {strides = array<i32>} : memref<27x4x128xf32, #tpu.memory_space<vmem>>, vector<1x4x128xf32>,
    %c12 = arith.constant 12 : index
    %c0_155 = arith.constant 0 : index
    %c0_156 = arith.constant 0 : index
    %156 = vector.load %arg1[%c12, %c0_155, %c0_156] : memref<27x4x4xf32, #tpu.memory_space<vmem>>, vector<1x4x4xf32>
    %157 = vector.shape_cast %156 : vector<1x4x4xf32> to vector<4x4xf32>
    %c12_157 = arith.constant 12 : index
    %c0_158 = arith.constant 0 : index
    %c0_159 = arith.constant 0 : index
    %158 = vector.load %arg2[%c12_157, %c0_158, %c0_159] : memref<27x4x128xf32, #tpu.memory_space<vmem>>, vector<1x4x128xf32>
    %159 = vector.shape_cast %158 : vector<1x4x128xf32> to vector<4x128xf32>
    %cst_160 = arith.constant dense<0.000000e+00> : vector<4x128xf32>
    %160 = tpu.matmul %157, %159, %cst_160 {dimension_numbers = #tpu.dot_dimension_numbers<[1], [0], [0], [1], [0, 0, 1, 1], [], []>} : vector<4x4xf32>, vector<4x128xf32>, vector<4x128xf32> -> vector<4x128xf32>
    %c12_161 = arith.constant 12 : index
    %c0_162 = arith.constant 0 : index
    %c0_163 = arith.constant 0 : index
    %161 = vector.load %arg0[%c12_161, %c0_162, %c0_163] : memref<27x4x128xf32, #tpu.memory_space<vmem>>, vector<1x4x128xf32>
    %162 = vector.shape_cast %161 : vector<1x4x128xf32> to vector<4x128xf32>
    %cst_164 = arith.constant 2.000000e+00 : f32
    %163 = vector.broadcast %cst_164 : f32 to vector<4x128xf32>
    %164 = arith.mulf %163, %160 : vector<4x128xf32>
    %165 = arith.addf %162, %164 : vector<4x128xf32>
    %c12_165 = arith.constant 12 : index
    %c0_166 = arith.constant 0 : index
    %c0_167 = arith.constant 0 : index
    %166 = vector.load %arg3[%c12_165, %c0_166, %c0_167] : memref<27x4x128xf32, #tpu.memory_space<vmem>>, vector<1x4x128xf32>
    %167 = vector.shape_cast %166 : vector<1x4x128xf32> to vector<4x128xf32>
    %168 = vector.shape_cast %165 : vector<4x128xf32> to vector<1x4x128xf32>
    tpu.vector_store %arg3[%c12_165, %c0_166, %c0_167], %168 {strides = array<i32>} : memref<27x4x128xf32, #tpu.memory_space<vmem>>, vector<1x4x128xf32>,
    %c13 = arith.constant 13 : index
    %c0_168 = arith.constant 0 : index
    %c0_169 = arith.constant 0 : index
    %169 = vector.load %arg1[%c13, %c0_168, %c0_169] : memref<27x4x4xf32, #tpu.memory_space<vmem>>, vector<1x4x4xf32>
    %170 = vector.shape_cast %169 : vector<1x4x4xf32> to vector<4x4xf32>
    %c13_170 = arith.constant 13 : index
    %c0_171 = arith.constant 0 : index
    %c0_172 = arith.constant 0 : index
    %171 = vector.load %arg2[%c13_170, %c0_171, %c0_172] : memref<27x4x128xf32, #tpu.memory_space<vmem>>, vector<1x4x128xf32>
    %172 = vector.shape_cast %171 : vector<1x4x128xf32> to vector<4x128xf32>
    %cst_173 = arith.constant dense<0.000000e+00> : vector<4x128xf32>
    %173 = tpu.matmul %170, %172, %cst_173 {dimension_numbers = #tpu.dot_dimension_numbers<[1], [0], [0], [1], [0, 0, 1, 1], [], []>} : vector<4x4xf32>, vector<4x128xf32>, vector<4x128xf32> -> vector<4x128xf32>
    %c13_174 = arith.constant 13 : index
    %c0_175 = arith.constant 0 : index
    %c0_176 = arith.constant 0 : index
    %174 = vector.load %arg0[%c13_174, %c0_175, %c0_176] : memref<27x4x128xf32, #tpu.memory_space<vmem>>, vector<1x4x128xf32>
    %175 = vector.shape_cast %174 : vector<1x4x128xf32> to vector<4x128xf32>
    %cst_177 = arith.constant 2.000000e+00 : f32
    %176 = vector.broadcast %cst_177 : f32 to vector<4x128xf32>
    %177 = arith.mulf %176, %173 : vector<4x128xf32>
    %178 = arith.addf %175, %177 : vector<4x128xf32>
    %c13_178 = arith.constant 13 : index
    %c0_179 = arith.constant 0 : index
    %c0_180 = arith.constant 0 : index
    %179 = vector.load %arg3[%c13_178, %c0_179, %c0_180] : memref<27x4x128xf32, #tpu.memory_space<vmem>>, vector<1x4x128xf32>
    %180 = vector.shape_cast %179 : vector<1x4x128xf32> to vector<4x128xf32>
    %181 = vector.shape_cast %178 : vector<4x128xf32> to vector<1x4x128xf32>
    tpu.vector_store %arg3[%c13_178, %c0_179, %c0_180], %181 {strides = array<i32>} : memref<27x4x128xf32, #tpu.memory_space<vmem>>, vector<1x4x128xf32>,
    %c14 = arith.constant 14 : index
    %c0_181 = arith.constant 0 : index
    %c0_182 = arith.constant 0 : index
    %182 = vector.load %arg1[%c14, %c0_181, %c0_182] : memref<27x4x4xf32, #tpu.memory_space<vmem>>, vector<1x4x4xf32>
    %183 = vector.shape_cast %182 : vector<1x4x4xf32> to vector<4x4xf32>
    %c14_183 = arith.constant 14 : index
    %c0_184 = arith.constant 0 : index
    %c0_185 = arith.constant 0 : index
    %184 = vector.load %arg2[%c14_183, %c0_184, %c0_185] : memref<27x4x128xf32, #tpu.memory_space<vmem>>, vector<1x4x128xf32>
    %185 = vector.shape_cast %184 : vector<1x4x128xf32> to vector<4x128xf32>
    %cst_186 = arith.constant dense<0.000000e+00> : vector<4x128xf32>
    %186 = tpu.matmul %183, %185, %cst_186 {dimension_numbers = #tpu.dot_dimension_numbers<[1], [0], [0], [1], [0, 0, 1, 1], [], []>} : vector<4x4xf32>, vector<4x128xf32>, vector<4x128xf32> -> vector<4x128xf32>
    %c14_187 = arith.constant 14 : index
    %c0_188 = arith.constant 0 : index
    %c0_189 = arith.constant 0 : index
    %187 = vector.load %arg0[%c14_187, %c0_188, %c0_189] : memref<27x4x128xf32, #tpu.memory_space<vmem>>, vector<1x4x128xf32>
    %188 = vector.shape_cast %187 : vector<1x4x128xf32> to vector<4x128xf32>
    %cst_190 = arith.constant 2.000000e+00 : f32
    %189 = vector.broadcast %cst_190 : f32 to vector<4x128xf32>
    %190 = arith.mulf %189, %186 : vector<4x128xf32>
    %191 = arith.addf %188, %190 : vector<4x128xf32>
    %c14_191 = arith.constant 14 : index
    %c0_192 = arith.constant 0 : index
    %c0_193 = arith.constant 0 : index
    %192 = vector.load %arg3[%c14_191, %c0_192, %c0_193] : memref<27x4x128xf32, #tpu.memory_space<vmem>>, vector<1x4x128xf32>
    %193 = vector.shape_cast %192 : vector<1x4x128xf32> to vector<4x128xf32>
    %194 = vector.shape_cast %191 : vector<4x128xf32> to vector<1x4x128xf32>
    tpu.vector_store %arg3[%c14_191, %c0_192, %c0_193], %194 {strides = array<i32>} : memref<27x4x128xf32, #tpu.memory_space<vmem>>, vector<1x4x128xf32>,
    %c15 = arith.constant 15 : index
    %c0_194 = arith.constant 0 : index
    %c0_195 = arith.constant 0 : index
    %195 = vector.load %arg1[%c15, %c0_194, %c0_195] : memref<27x4x4xf32, #tpu.memory_space<vmem>>, vector<1x4x4xf32>
    %196 = vector.shape_cast %195 : vector<1x4x4xf32> to vector<4x4xf32>
    %c15_196 = arith.constant 15 : index
    %c0_197 = arith.constant 0 : index
    %c0_198 = arith.constant 0 : index
    %197 = vector.load %arg2[%c15_196, %c0_197, %c0_198] : memref<27x4x128xf32, #tpu.memory_space<vmem>>, vector<1x4x128xf32>
    %198 = vector.shape_cast %197 : vector<1x4x128xf32> to vector<4x128xf32>
    %cst_199 = arith.constant dense<0.000000e+00> : vector<4x128xf32>
    %199 = tpu.matmul %196, %198, %cst_199 {dimension_numbers = #tpu.dot_dimension_numbers<[1], [0], [0], [1], [0, 0, 1, 1], [], []>} : vector<4x4xf32>, vector<4x128xf32>, vector<4x128xf32> -> vector<4x128xf32>
    %c15_200 = arith.constant 15 : index
    %c0_201 = arith.constant 0 : index
    %c0_202 = arith.constant 0 : index
    %200 = vector.load %arg0[%c15_200, %c0_201, %c0_202] : memref<27x4x128xf32, #tpu.memory_space<vmem>>, vector<1x4x128xf32>
    %201 = vector.shape_cast %200 : vector<1x4x128xf32> to vector<4x128xf32>
    %cst_203 = arith.constant 2.000000e+00 : f32
    %202 = vector.broadcast %cst_203 : f32 to vector<4x128xf32>
    %203 = arith.mulf %202, %199 : vector<4x128xf32>
    %204 = arith.addf %201, %203 : vector<4x128xf32>
    %c15_204 = arith.constant 15 : index
    %c0_205 = arith.constant 0 : index
    %c0_206 = arith.constant 0 : index
    %205 = vector.load %arg3[%c15_204, %c0_205, %c0_206] : memref<27x4x128xf32, #tpu.memory_space<vmem>>, vector<1x4x128xf32>
    %206 = vector.shape_cast %205 : vector<1x4x128xf32> to vector<4x128xf32>
    %207 = vector.shape_cast %204 : vector<4x128xf32> to vector<1x4x128xf32>
    tpu.vector_store %arg3[%c15_204, %c0_205, %c0_206], %207 {strides = array<i32>} : memref<27x4x128xf32, #tpu.memory_space<vmem>>, vector<1x4x128xf32>,
    %c16 = arith.constant 16 : index
    %c0_207 = arith.constant 0 : index
    %c0_208 = arith.constant 0 : index
    %208 = vector.load %arg1[%c16, %c0_207, %c0_208] : memref<27x4x4xf32, #tpu.memory_space<vmem>>, vector<1x4x4xf32>
    %209 = vector.shape_cast %208 : vector<1x4x4xf32> to vector<4x4xf32>
    %c16_209 = arith.constant 16 : index
    %c0_210 = arith.constant 0 : index
    %c0_211 = arith.constant 0 : index
    %210 = vector.load %arg2[%c16_209, %c0_210, %c0_211] : memref<27x4x128xf32, #tpu.memory_space<vmem>>, vector<1x4x128xf32>
    %211 = vector.shape_cast %210 : vector<1x4x128xf32> to vector<4x128xf32>
    %cst_212 = arith.constant dense<0.000000e+00> : vector<4x128xf32>
    %212 = tpu.matmul %209, %211, %cst_212 {dimension_numbers = #tpu.dot_dimension_numbers<[1], [0], [0], [1], [0, 0, 1, 1], [], []>} : vector<4x4xf32>, vector<4x128xf32>, vector<4x128xf32> -> vector<4x128xf32>
    %c16_213 = arith.constant 16 : index
    %c0_214 = arith.constant 0 : index
    %c0_215 = arith.constant 0 : index
    %213 = vector.load %arg0[%c16_213, %c0_214, %c0_215] : memref<27x4x128xf32, #tpu.memory_space<vmem>>, vector<1x4x128xf32>
    %214 = vector.shape_cast %213 : vector<1x4x128xf32> to vector<4x128xf32>
    %cst_216 = arith.constant 2.000000e+00 : f32
    %215 = vector.broadcast %cst_216 : f32 to vector<4x128xf32>
    %216 = arith.mulf %215, %212 : vector<4x128xf32>
    %217 = arith.addf %214, %216 : vector<4x128xf32>
    %c16_217 = arith.constant 16 : index
    %c0_218 = arith.constant 0 : index
    %c0_219 = arith.constant 0 : index
    %218 = vector.load %arg3[%c16_217, %c0_218, %c0_219] : memref<27x4x128xf32, #tpu.memory_space<vmem>>, vector<1x4x128xf32>
    %219 = vector.shape_cast %218 : vector<1x4x128xf32> to vector<4x128xf32>
    %220 = vector.shape_cast %217 : vector<4x128xf32> to vector<1x4x128xf32>
    tpu.vector_store %arg3[%c16_217, %c0_218, %c0_219], %220 {strides = array<i32>} : memref<27x4x128xf32, #tpu.memory_space<vmem>>, vector<1x4x128xf32>,
    %c17 = arith.constant 17 : index
    %c0_220 = arith.constant 0 : index
    %c0_221 = arith.constant 0 : index
    %221 = vector.load %arg1[%c17, %c0_220, %c0_221] : memref<27x4x4xf32, #tpu.memory_space<vmem>>, vector<1x4x4xf32>
    %222 = vector.shape_cast %221 : vector<1x4x4xf32> to vector<4x4xf32>
    %c17_222 = arith.constant 17 : index
    %c0_223 = arith.constant 0 : index
    %c0_224 = arith.constant 0 : index
    %223 = vector.load %arg2[%c17_222, %c0_223, %c0_224] : memref<27x4x128xf32, #tpu.memory_space<vmem>>, vector<1x4x128xf32>
    %224 = vector.shape_cast %223 : vector<1x4x128xf32> to vector<4x128xf32>
    %cst_225 = arith.constant dense<0.000000e+00> : vector<4x128xf32>
    %225 = tpu.matmul %222, %224, %cst_225 {dimension_numbers = #tpu.dot_dimension_numbers<[1], [0], [0], [1], [0, 0, 1, 1], [], []>} : vector<4x4xf32>, vector<4x128xf32>, vector<4x128xf32> -> vector<4x128xf32>
    %c17_226 = arith.constant 17 : index
    %c0_227 = arith.constant 0 : index
    %c0_228 = arith.constant 0 : index
    %226 = vector.load %arg0[%c17_226, %c0_227, %c0_228] : memref<27x4x128xf32, #tpu.memory_space<vmem>>, vector<1x4x128xf32>
    %227 = vector.shape_cast %226 : vector<1x4x128xf32> to vector<4x128xf32>
    %cst_229 = arith.constant 2.000000e+00 : f32
    %228 = vector.broadcast %cst_229 : f32 to vector<4x128xf32>
    %229 = arith.mulf %228, %225 : vector<4x128xf32>
    %230 = arith.addf %227, %229 : vector<4x128xf32>
    %c17_230 = arith.constant 17 : index
    %c0_231 = arith.constant 0 : index
    %c0_232 = arith.constant 0 : index
    %231 = vector.load %arg3[%c17_230, %c0_231, %c0_232] : memref<27x4x128xf32, #tpu.memory_space<vmem>>, vector<1x4x128xf32>
    %232 = vector.shape_cast %231 : vector<1x4x128xf32> to vector<4x128xf32>
    %233 = vector.shape_cast %230 : vector<4x128xf32> to vector<1x4x128xf32>
    tpu.vector_store %arg3[%c17_230, %c0_231, %c0_232], %233 {strides = array<i32>} : memref<27x4x128xf32, #tpu.memory_space<vmem>>, vector<1x4x128xf32>,
    %c18 = arith.constant 18 : index
    %c0_233 = arith.constant 0 : index
    %c0_234 = arith.constant 0 : index
    %234 = vector.load %arg1[%c18, %c0_233, %c0_234] : memref<27x4x4xf32, #tpu.memory_space<vmem>>, vector<1x4x4xf32>
    %235 = vector.shape_cast %234 : vector<1x4x4xf32> to vector<4x4xf32>
    %c18_235 = arith.constant 18 : index
    %c0_236 = arith.constant 0 : index
    %c0_237 = arith.constant 0 : index
    %236 = vector.load %arg2[%c18_235, %c0_236, %c0_237] : memref<27x4x128xf32, #tpu.memory_space<vmem>>, vector<1x4x128xf32>
    %237 = vector.shape_cast %236 : vector<1x4x128xf32> to vector<4x128xf32>
    %cst_238 = arith.constant dense<0.000000e+00> : vector<4x128xf32>
    %238 = tpu.matmul %235, %237, %cst_238 {dimension_numbers = #tpu.dot_dimension_numbers<[1], [0], [0], [1], [0, 0, 1, 1], [], []>} : vector<4x4xf32>, vector<4x128xf32>, vector<4x128xf32> -> vector<4x128xf32>
    %c18_239 = arith.constant 18 : index
    %c0_240 = arith.constant 0 : index
    %c0_241 = arith.constant 0 : index
    %239 = vector.load %arg0[%c18_239, %c0_240, %c0_241] : memref<27x4x128xf32, #tpu.memory_space<vmem>>, vector<1x4x128xf32>
    %240 = vector.shape_cast %239 : vector<1x4x128xf32> to vector<4x128xf32>
    %cst_242 = arith.constant 2.000000e+00 : f32
    %241 = vector.broadcast %cst_242 : f32 to vector<4x128xf32>
    %242 = arith.mulf %241, %238 : vector<4x128xf32>
    %243 = arith.addf %240, %242 : vector<4x128xf32>
    %c18_243 = arith.constant 18 : index
    %c0_244 = arith.constant 0 : index
    %c0_245 = arith.constant 0 : index
    %244 = vector.load %arg3[%c18_243, %c0_244, %c0_245] : memref<27x4x128xf32, #tpu.memory_space<vmem>>, vector<1x4x128xf32>
    %245 = vector.shape_cast %244 : vector<1x4x128xf32> to vector<4x128xf32>
    %246 = vector.shape_cast %243 : vector<4x128xf32> to vector<1x4x128xf32>
    tpu.vector_store %arg3[%c18_243, %c0_244, %c0_245], %246 {strides = array<i32>} : memref<27x4x128xf32, #tpu.memory_space<vmem>>, vector<1x4x128xf32>,
    %c19 = arith.constant 19 : index
    %c0_246 = arith.constant 0 : index
    %c0_247 = arith.constant 0 : index
    %247 = vector.load %arg1[%c19, %c0_246, %c0_247] : memref<27x4x4xf32, #tpu.memory_space<vmem>>, vector<1x4x4xf32>
    %248 = vector.shape_cast %247 : vector<1x4x4xf32> to vector<4x4xf32>
    %c19_248 = arith.constant 19 : index
    %c0_249 = arith.constant 0 : index
    %c0_250 = arith.constant 0 : index
    %249 = vector.load %arg2[%c19_248, %c0_249, %c0_250] : memref<27x4x128xf32, #tpu.memory_space<vmem>>, vector<1x4x128xf32>
    %250 = vector.shape_cast %249 : vector<1x4x128xf32> to vector<4x128xf32>
    %cst_251 = arith.constant dense<0.000000e+00> : vector<4x128xf32>
    %251 = tpu.matmul %248, %250, %cst_251 {dimension_numbers = #tpu.dot_dimension_numbers<[1], [0], [0], [1], [0, 0, 1, 1], [], []>} : vector<4x4xf32>, vector<4x128xf32>, vector<4x128xf32> -> vector<4x128xf32>
    %c19_252 = arith.constant 19 : index
    %c0_253 = arith.constant 0 : index
    %c0_254 = arith.constant 0 : index
    %252 = vector.load %arg0[%c19_252, %c0_253, %c0_254] : memref<27x4x128xf32, #tpu.memory_space<vmem>>, vector<1x4x128xf32>
    %253 = vector.shape_cast %252 : vector<1x4x128xf32> to vector<4x128xf32>
    %cst_255 = arith.constant 2.000000e+00 : f32
    %254 = vector.broadcast %cst_255 : f32 to vector<4x128xf32>
    %255 = arith.mulf %254, %251 : vector<4x128xf32>
    %256 = arith.addf %253, %255 : vector<4x128xf32>
    %c19_256 = arith.constant 19 : index
    %c0_257 = arith.constant 0 : index
    %c0_258 = arith.constant 0 : index
    %257 = vector.load %arg3[%c19_256, %c0_257, %c0_258] : memref<27x4x128xf32, #tpu.memory_space<vmem>>, vector<1x4x128xf32>
    %258 = vector.shape_cast %257 : vector<1x4x128xf32> to vector<4x128xf32>
    %259 = vector.shape_cast %256 : vector<4x128xf32> to vector<1x4x128xf32>
    tpu.vector_store %arg3[%c19_256, %c0_257, %c0_258], %259 {strides = array<i32>} : memref<27x4x128xf32, #tpu.memory_space<vmem>>, vector<1x4x128xf32>,
    %c20 = arith.constant 20 : index
    %c0_259 = arith.constant 0 : index
    %c0_260 = arith.constant 0 : index
    %260 = vector.load %arg1[%c20, %c0_259, %c0_260] : memref<27x4x4xf32, #tpu.memory_space<vmem>>, vector<1x4x4xf32>
    %261 = vector.shape_cast %260 : vector<1x4x4xf32> to vector<4x4xf32>
    %c20_261 = arith.constant 20 : index
    %c0_262 = arith.constant 0 : index
    %c0_263 = arith.constant 0 : index
    %262 = vector.load %arg2[%c20_261, %c0_262, %c0_263] : memref<27x4x128xf32, #tpu.memory_space<vmem>>, vector<1x4x128xf32>
    %263 = vector.shape_cast %262 : vector<1x4x128xf32> to vector<4x128xf32>
    %cst_264 = arith.constant dense<0.000000e+00> : vector<4x128xf32>
    %264 = tpu.matmul %261, %263, %cst_264 {dimension_numbers = #tpu.dot_dimension_numbers<[1], [0], [0], [1], [0, 0, 1, 1], [], []>} : vector<4x4xf32>, vector<4x128xf32>, vector<4x128xf32> -> vector<4x128xf32>
    %c20_265 = arith.constant 20 : index
    %c0_266 = arith.constant 0 : index
    %c0_267 = arith.constant 0 : index
    %265 = vector.load %arg0[%c20_265, %c0_266, %c0_267] : memref<27x4x128xf32, #tpu.memory_space<vmem>>, vector<1x4x128xf32>
    %266 = vector.shape_cast %265 : vector<1x4x128xf32> to vector<4x128xf32>
    %cst_268 = arith.constant 2.000000e+00 : f32
    %267 = vector.broadcast %cst_268 : f32 to vector<4x128xf32>
    %268 = arith.mulf %267, %264 : vector<4x128xf32>
    %269 = arith.addf %266, %268 : vector<4x128xf32>
    %c20_269 = arith.constant 20 : index
    %c0_270 = arith.constant 0 : index
    %c0_271 = arith.constant 0 : index
    %270 = vector.load %arg3[%c20_269, %c0_270, %c0_271] : memref<27x4x128xf32, #tpu.memory_space<vmem>>, vector<1x4x128xf32>
    %271 = vector.shape_cast %270 : vector<1x4x128xf32> to vector<4x128xf32>
    %272 = vector.shape_cast %269 : vector<4x128xf32> to vector<1x4x128xf32>
    tpu.vector_store %arg3[%c20_269, %c0_270, %c0_271], %272 {strides = array<i32>} : memref<27x4x128xf32, #tpu.memory_space<vmem>>, vector<1x4x128xf32>,
    %c21 = arith.constant 21 : index
    %c0_272 = arith.constant 0 : index
    %c0_273 = arith.constant 0 : index
    %273 = vector.load %arg1[%c21, %c0_272, %c0_273] : memref<27x4x4xf32, #tpu.memory_space<vmem>>, vector<1x4x4xf32>
    %274 = vector.shape_cast %273 : vector<1x4x4xf32> to vector<4x4xf32>
    %c21_274 = arith.constant 21 : index
    %c0_275 = arith.constant 0 : index
    %c0_276 = arith.constant 0 : index
    %275 = vector.load %arg2[%c21_274, %c0_275, %c0_276] : memref<27x4x128xf32, #tpu.memory_space<vmem>>, vector<1x4x128xf32>
    %276 = vector.shape_cast %275 : vector<1x4x128xf32> to vector<4x128xf32>
    %cst_277 = arith.constant dense<0.000000e+00> : vector<4x128xf32>
    %277 = tpu.matmul %274, %276, %cst_277 {dimension_numbers = #tpu.dot_dimension_numbers<[1], [0], [0], [1], [0, 0, 1, 1], [], []>} : vector<4x4xf32>, vector<4x128xf32>, vector<4x128xf32> -> vector<4x128xf32>
    %c21_278 = arith.constant 21 : index
    %c0_279 = arith.constant 0 : index
    %c0_280 = arith.constant 0 : index
    %278 = vector.load %arg0[%c21_278, %c0_279, %c0_280] : memref<27x4x128xf32, #tpu.memory_space<vmem>>, vector<1x4x128xf32>
    %279 = vector.shape_cast %278 : vector<1x4x128xf32> to vector<4x128xf32>
    %cst_281 = arith.constant 2.000000e+00 : f32
    %280 = vector.broadcast %cst_281 : f32 to vector<4x128xf32>
    %281 = arith.mulf %280, %277 : vector<4x128xf32>
    %282 = arith.addf %279, %281 : vector<4x128xf32>
    %c21_282 = arith.constant 21 : index
    %c0_283 = arith.constant 0 : index
    %c0_284 = arith.constant 0 : index
    %283 = vector.load %arg3[%c21_282, %c0_283, %c0_284] : memref<27x4x128xf32, #tpu.memory_space<vmem>>, vector<1x4x128xf32>
    %284 = vector.shape_cast %283 : vector<1x4x128xf32> to vector<4x128xf32>
    %285 = vector.shape_cast %282 : vector<4x128xf32> to vector<1x4x128xf32>
    tpu.vector_store %arg3[%c21_282, %c0_283, %c0_284], %285 {strides = array<i32>} : memref<27x4x128xf32, #tpu.memory_space<vmem>>, vector<1x4x128xf32>,
    %c22 = arith.constant 22 : index
    %c0_285 = arith.constant 0 : index
    %c0_286 = arith.constant 0 : index
    %286 = vector.load %arg1[%c22, %c0_285, %c0_286] : memref<27x4x4xf32, #tpu.memory_space<vmem>>, vector<1x4x4xf32>
    %287 = vector.shape_cast %286 : vector<1x4x4xf32> to vector<4x4xf32>
    %c22_287 = arith.constant 22 : index
    %c0_288 = arith.constant 0 : index
    %c0_289 = arith.constant 0 : index
    %288 = vector.load %arg2[%c22_287, %c0_288, %c0_289] : memref<27x4x128xf32, #tpu.memory_space<vmem>>, vector<1x4x128xf32>
    %289 = vector.shape_cast %288 : vector<1x4x128xf32> to vector<4x128xf32>
    %cst_290 = arith.constant dense<0.000000e+00> : vector<4x128xf32>
    %290 = tpu.matmul %287, %289, %cst_290 {dimension_numbers = #tpu.dot_dimension_numbers<[1], [0], [0], [1], [0, 0, 1, 1], [], []>} : vector<4x4xf32>, vector<4x128xf32>, vector<4x128xf32> -> vector<4x128xf32>
    %c22_291 = arith.constant 22 : index
    %c0_292 = arith.constant 0 : index
    %c0_293 = arith.constant 0 : index
    %291 = vector.load %arg0[%c22_291, %c0_292, %c0_293] : memref<27x4x128xf32, #tpu.memory_space<vmem>>, vector<1x4x128xf32>
    %292 = vector.shape_cast %291 : vector<1x4x128xf32> to vector<4x128xf32>
    %cst_294 = arith.constant 2.000000e+00 : f32
    %293 = vector.broadcast %cst_294 : f32 to vector<4x128xf32>
    %294 = arith.mulf %293, %290 : vector<4x128xf32>
    %295 = arith.addf %292, %294 : vector<4x128xf32>
    %c22_295 = arith.constant 22 : index
    %c0_296 = arith.constant 0 : index
    %c0_297 = arith.constant 0 : index
    %296 = vector.load %arg3[%c22_295, %c0_296, %c0_297] : memref<27x4x128xf32, #tpu.memory_space<vmem>>, vector<1x4x128xf32>
    %297 = vector.shape_cast %296 : vector<1x4x128xf32> to vector<4x128xf32>
    %298 = vector.shape_cast %295 : vector<4x128xf32> to vector<1x4x128xf32>
    tpu.vector_store %arg3[%c22_295, %c0_296, %c0_297], %298 {strides = array<i32>} : memref<27x4x128xf32, #tpu.memory_space<vmem>>, vector<1x4x128xf32>,
    %c23 = arith.constant 23 : index
    %c0_298 = arith.constant 0 : index
    %c0_299 = arith.constant 0 : index
    %299 = vector.load %arg1[%c23, %c0_298, %c0_299] : memref<27x4x4xf32, #tpu.memory_space<vmem>>, vector<1x4x4xf32>
    %300 = vector.shape_cast %299 : vector<1x4x4xf32> to vector<4x4xf32>
    %c23_300 = arith.constant 23 : index
    %c0_301 = arith.constant 0 : index
    %c0_302 = arith.constant 0 : index
    %301 = vector.load %arg2[%c23_300, %c0_301, %c0_302] : memref<27x4x128xf32, #tpu.memory_space<vmem>>, vector<1x4x128xf32>
    %302 = vector.shape_cast %301 : vector<1x4x128xf32> to vector<4x128xf32>
    %cst_303 = arith.constant dense<0.000000e+00> : vector<4x128xf32>
    %303 = tpu.matmul %300, %302, %cst_303 {dimension_numbers = #tpu.dot_dimension_numbers<[1], [0], [0], [1], [0, 0, 1, 1], [], []>} : vector<4x4xf32>, vector<4x128xf32>, vector<4x128xf32> -> vector<4x128xf32>
    %c23_304 = arith.constant 23 : index
    %c0_305 = arith.constant 0 : index
    %c0_306 = arith.constant 0 : index
    %304 = vector.load %arg0[%c23_304, %c0_305, %c0_306] : memref<27x4x128xf32, #tpu.memory_space<vmem>>, vector<1x4x128xf32>
    %305 = vector.shape_cast %304 : vector<1x4x128xf32> to vector<4x128xf32>
    %cst_307 = arith.constant 2.000000e+00 : f32
    %306 = vector.broadcast %cst_307 : f32 to vector<4x128xf32>
    %307 = arith.mulf %306, %303 : vector<4x128xf32>
    %308 = arith.addf %305, %307 : vector<4x128xf32>
    %c23_308 = arith.constant 23 : index
    %c0_309 = arith.constant 0 : index
    %c0_310 = arith.constant 0 : index
    %309 = vector.load %arg3[%c23_308, %c0_309, %c0_310] : memref<27x4x128xf32, #tpu.memory_space<vmem>>, vector<1x4x128xf32>
    %310 = vector.shape_cast %309 : vector<1x4x128xf32> to vector<4x128xf32>
    %311 = vector.shape_cast %308 : vector<4x128xf32> to vector<1x4x128xf32>
    tpu.vector_store %arg3[%c23_308, %c0_309, %c0_310], %311 {strides = array<i32>} : memref<27x4x128xf32, #tpu.memory_space<vmem>>, vector<1x4x128xf32>,
    %c24 = arith.constant 24 : index
    %c0_311 = arith.constant 0 : index
    %c0_312 = arith.constant 0 : index
    %312 = vector.load %arg1[%c24, %c0_311, %c0_312] : memref<27x4x4xf32, #tpu.memory_space<vmem>>, vector<1x4x4xf32>
    %313 = vector.shape_cast %312 : vector<1x4x4xf32> to vector<4x4xf32>
    %c24_313 = arith.constant 24 : index
    %c0_314 = arith.constant 0 : index
    %c0_315 = arith.constant 0 : index
    %314 = vector.load %arg2[%c24_313, %c0_314, %c0_315] : memref<27x4x128xf32, #tpu.memory_space<vmem>>, vector<1x4x128xf32>
    %315 = vector.shape_cast %314 : vector<1x4x128xf32> to vector<4x128xf32>
    %cst_316 = arith.constant dense<0.000000e+00> : vector<4x128xf32>
    %316 = tpu.matmul %313, %315, %cst_316 {dimension_numbers = #tpu.dot_dimension_numbers<[1], [0], [0], [1], [0, 0, 1, 1], [], []>} : vector<4x4xf32>, vector<4x128xf32>, vector<4x128xf32> -> vector<4x128xf32>
    %c24_317 = arith.constant 24 : index
    %c0_318 = arith.constant 0 : index
    %c0_319 = arith.constant 0 : index
    %317 = vector.load %arg0[%c24_317, %c0_318, %c0_319] : memref<27x4x128xf32, #tpu.memory_space<vmem>>, vector<1x4x128xf32>
    %318 = vector.shape_cast %317 : vector<1x4x128xf32> to vector<4x128xf32>
    %cst_320 = arith.constant 2.000000e+00 : f32
    %319 = vector.broadcast %cst_320 : f32 to vector<4x128xf32>
    %320 = arith.mulf %319, %316 : vector<4x128xf32>
    %321 = arith.addf %318, %320 : vector<4x128xf32>
    %c24_321 = arith.constant 24 : index
    %c0_322 = arith.constant 0 : index
    %c0_323 = arith.constant 0 : index
    %322 = vector.load %arg3[%c24_321, %c0_322, %c0_323] : memref<27x4x128xf32, #tpu.memory_space<vmem>>, vector<1x4x128xf32>
    %323 = vector.shape_cast %322 : vector<1x4x128xf32> to vector<4x128xf32>
    %324 = vector.shape_cast %321 : vector<4x128xf32> to vector<1x4x128xf32>
    tpu.vector_store %arg3[%c24_321, %c0_322, %c0_323], %324 {strides = array<i32>} : memref<27x4x128xf32, #tpu.memory_space<vmem>>, vector<1x4x128xf32>,
    %c25 = arith.constant 25 : index
    %c0_324 = arith.constant 0 : index
    %c0_325 = arith.constant 0 : index
    %325 = vector.load %arg1[%c25, %c0_324, %c0_325] : memref<27x4x4xf32, #tpu.memory_space<vmem>>, vector<1x4x4xf32>
    %326 = vector.shape_cast %325 : vector<1x4x4xf32> to vector<4x4xf32>
    %c25_326 = arith.constant 25 : index
    %c0_327 = arith.constant 0 : index
    %c0_328 = arith.constant 0 : index
    %327 = vector.load %arg2[%c25_326, %c0_327, %c0_328] : memref<27x4x128xf32, #tpu.memory_space<vmem>>, vector<1x4x128xf32>
    %328 = vector.shape_cast %327 : vector<1x4x128xf32> to vector<4x128xf32>
    %cst_329 = arith.constant dense<0.000000e+00> : vector<4x128xf32>
    %329 = tpu.matmul %326, %328, %cst_329 {dimension_numbers = #tpu.dot_dimension_numbers<[1], [0], [0], [1], [0, 0, 1, 1], [], []>} : vector<4x4xf32>, vector<4x128xf32>, vector<4x128xf32> -> vector<4x128xf32>
    %c25_330 = arith.constant 25 : index
    %c0_331 = arith.constant 0 : index
    %c0_332 = arith.constant 0 : index
    %330 = vector.load %arg0[%c25_330, %c0_331, %c0_332] : memref<27x4x128xf32, #tpu.memory_space<vmem>>, vector<1x4x128xf32>
    %331 = vector.shape_cast %330 : vector<1x4x128xf32> to vector<4x128xf32>
    %cst_333 = arith.constant 2.000000e+00 : f32
    %332 = vector.broadcast %cst_333 : f32 to vector<4x128xf32>
    %333 = arith.mulf %332, %329 : vector<4x128xf32>
    %334 = arith.addf %331, %333 : vector<4x128xf32>
    %c25_334 = arith.constant 25 : index
    %c0_335 = arith.constant 0 : index
    %c0_336 = arith.constant 0 : index
    %335 = vector.load %arg3[%c25_334, %c0_335, %c0_336] : memref<27x4x128xf32, #tpu.memory_space<vmem>>, vector<1x4x128xf32>
    %336 = vector.shape_cast %335 : vector<1x4x128xf32> to vector<4x128xf32>
    %337 = vector.shape_cast %334 : vector<4x128xf32> to vector<1x4x128xf32>
    tpu.vector_store %arg3[%c25_334, %c0_335, %c0_336], %337 {strides = array<i32>} : memref<27x4x128xf32, #tpu.memory_space<vmem>>, vector<1x4x128xf32>,
    %c26 = arith.constant 26 : index
    %c0_337 = arith.constant 0 : index
    %c0_338 = arith.constant 0 : index
    %338 = vector.load %arg1[%c26, %c0_337, %c0_338] : memref<27x4x4xf32, #tpu.memory_space<vmem>>, vector<1x4x4xf32>
    %339 = vector.shape_cast %338 : vector<1x4x4xf32> to vector<4x4xf32>
    %c26_339 = arith.constant 26 : index
    %c0_340 = arith.constant 0 : index
    %c0_341 = arith.constant 0 : index
    %340 = vector.load %arg2[%c26_339, %c0_340, %c0_341] : memref<27x4x128xf32, #tpu.memory_space<vmem>>, vector<1x4x128xf32>
    %341 = vector.shape_cast %340 : vector<1x4x128xf32> to vector<4x128xf32>
    %cst_342 = arith.constant dense<0.000000e+00> : vector<4x128xf32>
    %342 = tpu.matmul %339, %341, %cst_342 {dimension_numbers = #tpu.dot_dimension_numbers<[1], [0], [0], [1], [0, 0, 1, 1], [], []>} : vector<4x4xf32>, vector<4x128xf32>, vector<4x128xf32> -> vector<4x128xf32>
    %c26_343 = arith.constant 26 : index
    %c0_344 = arith.constant 0 : index
    %c0_345 = arith.constant 0 : index
    %343 = vector.load %arg0[%c26_343, %c0_344, %c0_345] : memref<27x4x128xf32, #tpu.memory_space<vmem>>, vector<1x4x128xf32>
    %344 = vector.shape_cast %343 : vector<1x4x128xf32> to vector<4x128xf32>
    %cst_346 = arith.constant 2.000000e+00 : f32
    %345 = vector.broadcast %cst_346 : f32 to vector<4x128xf32>
    %346 = arith.mulf %345, %342 : vector<4x128xf32>
    %347 = arith.addf %344, %346 : vector<4x128xf32>
    %c26_347 = arith.constant 26 : index
    %c0_348 = arith.constant 0 : index
    %c0_349 = arith.constant 0 : index
    %348 = vector.load %arg3[%c26_347, %c0_348, %c0_349] : memref<27x4x128xf32, #tpu.memory_space<vmem>>, vector<1x4x128xf32>
    %349 = vector.shape_cast %348 : vector<1x4x128xf32> to vector<4x128xf32>
    %350 = vector.shape_cast %347 : vector<4x128xf32> to vector<1x4x128xf32>
    tpu.vector_store %arg3[%c26_347, %c0_348, %c0_349], %350 {strides = array<i32>} : memref<27x4x128xf32, #tpu.memory_space<vmem>>, vector<1x4x128xf32>,
    return
  }
}

module attributes {stable_mosaic.version = 11 : i64} {
  func.func @_conv_tap_kernel(%arg0: i32, %arg1: i32, %arg2: i32, %arg3: i32, %arg4: i32, %arg5: memref<1x1x1x8x18x4xf32, #tpu.memory_space<vmem>>, %arg6: memref<3x36x128xf32, #tpu.memory_space<vmem>>, %arg7: memref<1x128xf32, #tpu.memory_space<vmem>>, %arg8: memref<1x1x1x96x128xf32, #tpu.memory_space<vmem>>) attributes {dimension_semantics = [#tpu.dimension_semantics<parallel>, #tpu.dimension_semantics<parallel>, #tpu.dimension_semantics<parallel>, #tpu.dimension_semantics<parallel>, #tpu.dimension_semantics<arbitrary>], iteration_bounds = array<i64: 2, 6, 3, 1, 3>, scalar_prefetch = 0 : i64, scratch_operands = 0 : i64, tpu.core_type = #tpu.core_type<tc>, window_params = [{transform_indices = @transform_0, window_bounds = array<i64: 1, 1, 1, 8, 18, 4>}, {transform_indices = @transform_1, window_bounds = array<i64: 3, 36, 128>}, {transform_indices = @transform_2, window_bounds = array<i64: 1, 128>}, {transform_indices = @transform_3, window_bounds = array<i64: 1, 1, 1, 96, 128>}]} {
    %c0 = arith.constant 0 : index
    %c0_0 = arith.constant 0 : index
    %c0_1 = arith.constant 0 : index
    %c0_2 = arith.constant 0 : index
    %c0_3 = arith.constant 0 : index
    %c0_4 = arith.constant 0 : index
    %0 = vector.load %arg5[%c0, %c0_0, %c0_1, %c0_2, %c0_3, %c0_4] : memref<1x1x1x8x18x4xf32, #tpu.memory_space<vmem>>, vector<1x1x1x8x18x4xf32>
    %1 = vector.shape_cast %0 : vector<1x1x1x8x18x4xf32> to vector<8x18x4xf32>
    %2 = vector.extract_strided_slice %1 {offsets = [0, 0, 0], sizes = [6, 16, 4], strides = [1, 1, 1]} : vector<8x18x4xf32> to vector<6x16x4xf32>
    %3 = vector.shape_cast %2 : vector<6x16x4xf32> to vector<96x4xf32>
    %4 = vector.extract_strided_slice %1 {offsets = [0, 1, 0], sizes = [6, 16, 4], strides = [1, 1, 1]} : vector<8x18x4xf32> to vector<6x16x4xf32>
    %5 = vector.shape_cast %4 : vector<6x16x4xf32> to vector<96x4xf32>
    %6 = vector.extract_strided_slice %1 {offsets = [0, 2, 0], sizes = [6, 16, 4], strides = [1, 1, 1]} : vector<8x18x4xf32> to vector<6x16x4xf32>
    %7 = vector.shape_cast %6 : vector<6x16x4xf32> to vector<96x4xf32>
    %8 = vector.extract_strided_slice %1 {offsets = [1, 0, 0], sizes = [6, 16, 4], strides = [1, 1, 1]} : vector<8x18x4xf32> to vector<6x16x4xf32>
    %9 = vector.shape_cast %8 : vector<6x16x4xf32> to vector<96x4xf32>
    %10 = vector.extract_strided_slice %1 {offsets = [1, 1, 0], sizes = [6, 16, 4], strides = [1, 1, 1]} : vector<8x18x4xf32> to vector<6x16x4xf32>
    %11 = vector.shape_cast %10 : vector<6x16x4xf32> to vector<96x4xf32>
    %12 = vector.extract_strided_slice %1 {offsets = [1, 2, 0], sizes = [6, 16, 4], strides = [1, 1, 1]} : vector<8x18x4xf32> to vector<6x16x4xf32>
    %13 = vector.shape_cast %12 : vector<6x16x4xf32> to vector<96x4xf32>
    %14 = vector.extract_strided_slice %1 {offsets = [2, 0, 0], sizes = [6, 16, 4], strides = [1, 1, 1]} : vector<8x18x4xf32> to vector<6x16x4xf32>
    %15 = vector.shape_cast %14 : vector<6x16x4xf32> to vector<96x4xf32>
    %16 = vector.extract_strided_slice %1 {offsets = [2, 1, 0], sizes = [6, 16, 4], strides = [1, 1, 1]} : vector<8x18x4xf32> to vector<6x16x4xf32>
    %17 = vector.shape_cast %16 : vector<6x16x4xf32> to vector<96x4xf32>
    %18 = vector.extract_strided_slice %1 {offsets = [2, 2, 0], sizes = [6, 16, 4], strides = [1, 1, 1]} : vector<8x18x4xf32> to vector<6x16x4xf32>
    %19 = vector.shape_cast %18 : vector<6x16x4xf32> to vector<96x4xf32>
    %20 = tpu.concatenate %3, %5, %7, %9, %11, %13, %15, %17, %19 in 1 : vector<96x4xf32>, vector<96x4xf32>, vector<96x4xf32>, vector<96x4xf32>, vector<96x4xf32>, vector<96x4xf32>, vector<96x4xf32>, vector<96x4xf32>, vector<96x4xf32> -> vector<96x36xf32>
    %21 = arith.index_cast %arg4 : i32 to index
    %c0_5 = arith.constant 0 : index
    %c0_6 = arith.constant 0 : index
    %22 = vector.load %arg6[%21, %c0_5, %c0_6] : memref<3x36x128xf32, #tpu.memory_space<vmem>>, vector<1x36x128xf32>
    %23 = vector.shape_cast %22 : vector<1x36x128xf32> to vector<36x128xf32>
    %cst = arith.constant dense<0.000000e+00> : vector<96x128xf32>
    %24 = tpu.matmul %20, %23, %cst {dimension_numbers = #tpu.dot_dimension_numbers<[1], [0], [0], [1], [0, 0, 1, 1], [], []>} : vector<96x36xf32>, vector<36x128xf32>, vector<96x128xf32> -> vector<96x128xf32>
    %c0_i32 = arith.constant 0 : i32
    %25 = arith.cmpi eq, %arg4, %c0_i32 : i32
    %26 = arith.extui %25 : i1 to i32
    %c0_i32_7 = arith.constant 0 : i32
    %27 = arith.cmpi ne, %26, %c0_i32_7 : i32
    scf.if %27 {
      %c0_10 = arith.constant 0 : index
      %c0_11 = arith.constant 0 : index
      %31 = vector.load %arg7[%c0_10, %c0_11] : memref<1x128xf32, #tpu.memory_space<vmem>>, vector<1x128xf32>
      %32 = vector.broadcast %31 : vector<1x128xf32> to vector<96x128xf32>
      %33 = arith.addf %24, %32 : vector<96x128xf32>
      %c0_12 = arith.constant 0 : index
      %c0_13 = arith.constant 0 : index
      %c0_14 = arith.constant 0 : index
      %c0_15 = arith.constant 0 : index
      %c0_16 = arith.constant 0 : index
      %34 = vector.load %arg8[%c0_12, %c0_13, %c0_14, %c0_15, %c0_16] : memref<1x1x1x96x128xf32, #tpu.memory_space<vmem>>, vector<1x1x1x96x128xf32>
      %35 = vector.shape_cast %34 : vector<1x1x1x96x128xf32> to vector<96x128xf32>
      %36 = vector.shape_cast %33 : vector<96x128xf32> to vector<1x1x1x96x128xf32>
      tpu.vector_store %arg8[%c0_12, %c0_13, %c0_14, %c0_15, %c0_16], %36 {strides = array<i32>} : memref<1x1x1x96x128xf32, #tpu.memory_space<vmem>>, vector<1x1x1x96x128xf32>,
    } else {
    }
    %c0_i32_8 = arith.constant 0 : i32
    %28 = arith.cmpi sgt, %arg4, %c0_i32_8 : i32
    %29 = arith.extui %28 : i1 to i32
    %c0_i32_9 = arith.constant 0 : i32
    %30 = arith.cmpi ne, %29, %c0_i32_9 : i32
    scf.if %30 {
      %c0_10 = arith.constant 0 : index
      %c0_11 = arith.constant 0 : index
      %c0_12 = arith.constant 0 : index
      %c0_13 = arith.constant 0 : index
      %c0_14 = arith.constant 0 : index
      %31 = vector.load %arg8[%c0_10, %c0_11, %c0_12, %c0_13, %c0_14] : memref<1x1x1x96x128xf32, #tpu.memory_space<vmem>>, vector<1x1x1x96x128xf32>
      %32 = vector.shape_cast %31 : vector<1x1x1x96x128xf32> to vector<96x128xf32>
      %33 = arith.addf %32, %24 : vector<96x128xf32>
      %c0_15 = arith.constant 0 : index
      %c0_16 = arith.constant 0 : index
      %c0_17 = arith.constant 0 : index
      %c0_18 = arith.constant 0 : index
      %c0_19 = arith.constant 0 : index
      %34 = vector.load %arg8[%c0_15, %c0_16, %c0_17, %c0_18, %c0_19] : memref<1x1x1x96x128xf32, #tpu.memory_space<vmem>>, vector<1x1x1x96x128xf32>
      %35 = vector.shape_cast %34 : vector<1x1x1x96x128xf32> to vector<96x128xf32>
      %36 = vector.shape_cast %33 : vector<96x128xf32> to vector<1x1x1x96x128xf32>
      tpu.vector_store %arg8[%c0_15, %c0_16, %c0_17, %c0_18, %c0_19], %36 {strides = array<i32>} : memref<1x1x1x96x128xf32, #tpu.memory_space<vmem>>, vector<1x1x1x96x128xf32>,
    } else {
    }
    return
  }
  func.func @transform_0(%arg0: i32, %arg1: i32, %arg2: i32, %arg3: i32, %arg4: i32) -> (i32, i32, i32, i32, i32, i32) {
    %c1_i32 = arith.constant 1 : i32
    %0 = arith.muli %arg1, %c1_i32 : i32
    %c1_i32_0 = arith.constant 1 : i32
    %1 = arith.muli %arg4, %c1_i32_0 : i32
    %2 = arith.addi %0, %1 : i32
    %c0_i32 = arith.constant 0 : i32
    %c0_i32_1 = arith.constant 0 : i32
    %c0_i32_2 = arith.constant 0 : i32
    %c0_i32_3 = arith.constant 0 : i32
    return %arg0, %2, %arg2, %c0_i32, %c0_i32_1, %c0_i32_2 : i32, i32, i32, i32, i32, i32
  }
  func.func @transform_1(%arg0: i32, %arg1: i32, %arg2: i32, %arg3: i32, %arg4: i32) -> (i32, i32, i32) {
    %c0_i32 = arith.constant 0 : i32
    %c0_i32_0 = arith.constant 0 : i32
    %c0_i32_1 = arith.constant 0 : i32
    return %c0_i32, %c0_i32_0, %arg3 : i32, i32, i32
  }
  func.func @transform_2(%arg0: i32, %arg1: i32, %arg2: i32, %arg3: i32, %arg4: i32) -> (i32, i32) {
    %c0_i32 = arith.constant 0 : i32
    %c0_i32_0 = arith.constant 0 : i32
    return %c0_i32, %arg3 : i32, i32
  }
  func.func @transform_3(%arg0: i32, %arg1: i32, %arg2: i32, %arg3: i32, %arg4: i32) -> (i32, i32, i32, i32, i32) {
    %c0_i32 = arith.constant 0 : i32
    %c0_i32_0 = arith.constant 0 : i32
    return %arg0, %arg1, %arg2, %c0_i32, %arg3 : i32, i32, i32, i32, i32
  }
}

</mosaic_0001>

<bundles_post_ra>
// kernel: fwd.2
= control target key start
LH: loop header
LB: loop body
LE: loop exit
PB: predicated region body
PF: predicated region fallthrough
CT: control target
= control target key end

     0   :  { %vm20_vm0 = vcmask 1043456   ;;  %vm16_vm1 = vcmask 31744   ;;  %v2687_v0 = vmov 0.0   ;;  %vm2688_vm2 = vmmov 0   ;;  %s3168_s2 = inlined_call_operand.vmem [shape: f32[27,4,128], index: 2, kind: input, shape index: {}]   ;;  %s3169_s1 = inlined_call_operand.vmem [shape: f32[27,4,4], index: 1, kind: input, shape index: {}]   ;;  %s3170_s0 = inlined_call_operand.vmem [shape: f32[27,4,128], index: 0, kind: input, shape index: {}]   ;;  %s3171_s3 = inlined_call_operand.vmem [shape: f32[27,4,128], index: 3, kind: output, shape index: {}]  }
   0x1   :  { %2550 = vmatprep.subr.mxu0 %v2687_v0  ;;  %v15_v1 = vld [vmem:[%s3168_s2] sm:$0xf]  ;;  %2552 = vmatprep.mubr.msk.f32.mxu0 %vm2688_vm2, %v2687_v0  ;;  %v2347_v3 = vld [vmem:[%s3168_s2 + $0x8] sm:$0xf]  ;;  %v2341_v4 = vld [vmem:[%s3168_s2 + $0x4] sm:$0xf] }
   0x2   :  { %v14_v2 = vld [vmem:[%s3169_s1] sm:$0xf]  ;;  %2551 = vmatpush3.msk.msra.mxu0 %vm20_vm0, %v15_v1  ;;  %2555 = vmatprep.subr.mxu1 %v2687_v0  ;;  %v2340_v5 = vld [vmem:[%s3169_s1 + $0x4] sm:$0xf]  ;;  %v2346_v6 = vld [vmem:[%s3169_s1 + $0x8] sm:$0xf] }
   0x3   :  { %2553 = vmatmul.mubr.msk.f32.vlgmr.msra.gmra.mxu0 %vm16_vm1, %v14_v2  ;;  %2560 = vmatprep.subr.mxu0 %v2687_v0  ;;  %v2353_v7 = vld [vmem:[%s3168_s2 + $0xc] sm:$0xf]  ;;  %v2359_v8 = vld [vmem:[%s3168_s2 + $0x10] sm:$0xf]  ;;  %v2365_v11 = vld [vmem:[%s3168_s2 + $0x14] sm:$0xf] }
   0x4   :  { %2561 = vmatpush3.msk.msra.mxu0 %vm20_vm0, %v2347_v3  ;;  %2556 = vmatpush3.msk.msra.mxu1 %vm20_vm0, %v2341_v4  ;;  %v2352_v9 = vld [vmem:[%s3169_s1 + $0xc] sm:$0xf]  ;;  %v2358_v10 = vld [vmem:[%s3169_s1 + $0x10] sm:$0xf]  ;;  %v2371_v12 = vld [vmem:[%s3168_s2 + $0x18] sm:$0xf] }
   0x5   :  { %2557 = vmatprep.mubr.msk.f32.mxu1 %vm2688_vm2, %v2687_v0  ;;  %2562 = vmatprep.mubr.msk.f32.mxu0 %vm2688_vm2, %v2687_v0  ;;  %v2364_v13 = vld [vmem:[%s3169_s1 + $0x14] sm:$0xf]  ;;  %v2370_v14 = vld [vmem:[%s3169_s1 + $0x18] sm:$0xf]  ;;  %v2377_v15 = vld [vmem:[%s3168_s2 + $0x1c] sm:$0xf] }
   0x6   :  { %2558 = vmatmul.mubr.msk.f32.vlgmr.msra.gmra.mxu1 %vm16_vm1, %v2340_v5  ;;  %2565 = vmatprep.subr.mxu1 %v2687_v0  ;;  %v2383_v16 = vld [vmem:[%s3168_s2 + $0x20] sm:$0xf]  ;;  %v2376_v17 = vld [vmem:[%s3169_s1 + $0x1c] sm:$0xf]  ;;  %v2389_v19 = vld [vmem:[%s3168_s2 + $0x24] sm:$0xf] }
   0x7   :  { %2563 = vmatmul.mubr.msk.f32.vlgmr.msra.gmra.mxu0 %vm16_vm1, %v2346_v6  ;;  %2570 = vmatprep.subr.mxu0 %v2687_v0  ;;  %v2382_v18 = vld [vmem:[%s3169_s1 + $0x20] sm:$0xf]  ;;  %v2395_v20 = vld [vmem:[%s3168_s2 + $0x28] sm:$0xf]  ;;  %v2388_v21 = vld [vmem:[%s3169_s1 + $0x24] sm:$0xf] }
   0x8   :  { %2566 = vmatpush3.msk.msra.mxu1 %vm20_vm0, %v2353_v7  ;;  %2571 = vmatpush3.msk.msra.mxu0 %vm20_vm0, %v2359_v8  ;;  %v2394_v22 = vld [vmem:[%s3169_s1 + $0x28] sm:$0xf]  ;;  %v2401_v23 = vld [vmem:[%s3168_s2 + $0x2c] sm:$0xf]  ;;  %v2407_v24 = vld [vmem:[%s3168_s2 + $0x30] sm:$0xf] }
   0x9   :  { %2567 = vmatprep.mubr.msk.f32.mxu1 %vm2688_vm2, %v2687_v0  ;;  %2572 = vmatprep.mubr.msk.f32.mxu0 %vm2688_vm2, %v2687_v0  ;;  %v2400_v25 = vld [vmem:[%s3169_s1 + $0x2c] sm:$0xf]  ;;  %v2406_v26 = vld [vmem:[%s3169_s1 + $0x30] sm:$0xf]  ;;  %v2413_v27 = vld [vmem:[%s3168_s2 + $0x34] sm:$0xf] }
   0xa   :  { %2568 = vmatmul.mubr.msk.f32.vlgmr.msra.gmra.mxu1 %vm16_vm1, %v2352_v9  ;;  %2575 = vmatprep.subr.mxu1 %v2687_v0  ;;  %v2419_v28 = vld [vmem:[%s3168_s2 + $0x38] sm:$0xf]  ;;  %v2412_v29 = vld [vmem:[%s3169_s1 + $0x34] sm:$0xf]  ;;  %v2425_v31 = vld [vmem:[%s3168_s2 + $0x3c] sm:$0xf] }
   0xb   :  { %2573 = vmatmul.mubr.msk.f32.vlgmr.msra.gmra.mxu0 %vm16_vm1, %v2358_v10  ;;  %2580 = vmatprep.subr.mxu0 %v2687_v0  ;;  %v2418_v30 = vld [vmem:[%s3169_s1 + $0x38] sm:$0xf]  ;;  %v2431_v32 = vld [vmem:[%s3168_s2 + $0x40] sm:$0xf]  ;;  %v2424_v33 = vld [vmem:[%s3169_s1 + $0x3c] sm:$0xf] }
   0xc   :  { %2576 = vmatpush3.msk.msra.mxu1 %vm20_vm0, %v2365_v11  ;;  %2581 = vmatpush3.msk.msra.mxu0 %vm20_vm0, %v2371_v12  ;;  %v2430_v34 = vld [vmem:[%s3169_s1 + $0x40] sm:$0xf]  ;;  %v2437_v35 = vld [vmem:[%s3168_s2 + $0x44] sm:$0xf]  ;;  %v2443_v36 = vld [vmem:[%s3168_s2 + $0x48] sm:$0xf] }
   0xd   :  { %2577 = vmatprep.mubr.msk.f32.mxu1 %vm2688_vm2, %v2687_v0  ;;  %2582 = vmatprep.mubr.msk.f32.mxu0 %vm2688_vm2, %v2687_v0  ;;  %v2436_v37 = vld [vmem:[%s3169_s1 + $0x44] sm:$0xf]  ;;  %v2442_v38 = vld [vmem:[%s3169_s1 + $0x48] sm:$0xf]  ;;  %v2449_v39 = vld [vmem:[%s3168_s2 + $0x4c] sm:$0xf] }
   0xe   :  { %2578 = vmatmul.mubr.msk.f32.vlgmr.msra.gmra.mxu1 %vm16_vm1, %v2364_v13  ;;  %2585 = vmatprep.subr.mxu1 %v2687_v0  ;;  %v2455_v40 = vld [vmem:[%s3168_s2 + $0x50] sm:$0xf]  ;;  %v2448_v41 = vld [vmem:[%s3169_s1 + $0x4c] sm:$0xf]  ;;  %v2461_v43 = vld [vmem:[%s3168_s2 + $0x54] sm:$0xf] }
   0xf   :  { %2583 = vmatmul.mubr.msk.f32.vlgmr.msra.gmra.mxu0 %vm16_vm1, %v2370_v14  ;;  %2590 = vmatprep.subr.mxu0 %v2687_v0  ;;  %v2454_v42 = vld [vmem:[%s3169_s1 + $0x50] sm:$0xf]  ;;  %v2467_v44 = vld [vmem:[%s3168_s2 + $0x58] sm:$0xf]  ;;  %v2460_v45 = vld [vmem:[%s3169_s1 + $0x54] sm:$0xf] }
  0x10   :  { %2586 = vmatpush3.msk.msra.mxu1 %vm20_vm0, %v2377_v15  ;;  %2591 = vmatpush3.msk.msra.mxu0 %vm20_vm0, %v2383_v16  ;;  %v2466_v46 = vld [vmem:[%s3169_s1 + $0x58] sm:$0xf]  ;;  %v2473_v47 = vld [vmem:[%s3168_s2 + $0x5c] sm:$0xf]  ;;  %v2479_v48 = vld [vmem:[%s3168_s2 + $0x60] sm:$0xf] }
  0x11   :  { %2587 = vmatprep.mubr.msk.f32.mxu1 %vm2688_vm2, %v2687_v0  ;;  %2592 = vmatprep.mubr.msk.f32.mxu0 %vm2688_vm2, %v2687_v0  ;;  %v2472_v49 = vld [vmem:[%s3169_s1 + $0x5c] sm:$0xf]  ;;  %v2478_v50 = vld [vmem:[%s3169_s1 + $0x60] sm:$0xf]  ;;  %v2485_v51 = vld [vmem:[%s3168_s2 + $0x64] sm:$0xf] }
  0x12   :  { %2588 = vmatmul.mubr.msk.f32.vlgmr.msra.gmra.mxu1 %vm16_vm1, %v2376_v17  ;;  %2595 = vmatprep.subr.mxu1 %v2687_v0  ;;  %v2491_v52 = vld [vmem:[%s3168_s2 + $0x68] sm:$0xf]  ;;  %v2484_v53 = vld [vmem:[%s3169_s1 + $0x64] sm:$0xf]  ;;  %v94_v56 = vld [vmem:[%s3170_s0] sm:$0xf] }
  0x13   :  { %2593 = vmatmul.mubr.msk.f32.vlgmr.msra.gmra.mxu0 %vm16_vm1, %v2382_v18  ;;  %2600 = vmatprep.subr.mxu0 %v2687_v0  ;;  %v2490_v54 = vld [vmem:[%s3169_s1 + $0x68] sm:$0xf]  ;;  %v2344_v61 = vld [vmem:[%s3170_s0 + $0x4] sm:$0xf]  ;;  %v2356_v7 = vld [vmem:[%s3170_s0 + $0xc] sm:$0xf] }
  0x14   :  { %2596 = vmatpush3.msk.msra.mxu1 %vm20_vm0, %v2389_v19  ;;  %2601 = vmatpush3.msk.msra.mxu0 %vm20_vm0, %v2395_v20  ;;  %v2362_v10 = vld [vmem:[%s3170_s0 + $0x10] sm:$0xf]  ;;  %v2368_v17 = vld [vmem:[%s3170_s0 + $0x14] sm:$0xf]  ;;  %v2374_v20 = vld [vmem:[%s3170_s0 + $0x18] sm:$0xf] }
  0x15   :  { %2597 = vmatprep.mubr.msk.f32.mxu1 %vm2688_vm2, %v2687_v0  ;;  %2602 = vmatprep.mubr.msk.f32.mxu0 %vm2688_vm2, %v2687_v0 }
  0x16   :  { %2598 = vmatmul.mubr.msk.f32.vlgmr.msra.gmra.mxu1 %vm16_vm1, %v2388_v21  ;;  %2605 = vmatprep.subr.mxu1 %v2687_v0 }
  0x17   :  { %2603 = vmatmul.mubr.msk.f32.vlgmr.msra.gmra.mxu0 %vm16_vm1, %v2394_v22  ;;  %2610 = vmatprep.subr.mxu0 %v2687_v0 }
  0x18   :  { %2606 = vmatpush3.msk.msra.mxu1 %vm20_vm0, %v2401_v23  ;;  %2611 = vmatpush3.msk.msra.mxu0 %vm20_vm0, %v2407_v24 }
  0x19   :  { %2607 = vmatprep.mubr.msk.f32.mxu1 %vm2688_vm2, %v2687_v0  ;;  %2612 = vmatprep.mubr.msk.f32.mxu0 %vm2688_vm2, %v2687_v0 }
  0x1a   :  { %2608 = vmatmul.mubr.msk.f32.vlgmr.msra.gmra.mxu1 %vm16_vm1, %v2400_v25  ;;  %2615 = vmatprep.subr.mxu1 %v2687_v0 }
  0x1b   :  { %2613 = vmatmul.mubr.msk.f32.vlgmr.msra.gmra.mxu0 %vm16_vm1, %v2406_v26  ;;  %2620 = vmatprep.subr.mxu0 %v2687_v0 }
  0x1c   :  { %2616 = vmatpush3.msk.msra.mxu1 %vm20_vm0, %v2413_v27  ;;  %2621 = vmatpush3.msk.msra.mxu0 %vm20_vm0, %v2419_v28  ;;  %v2380_v27 = vld [vmem:[%s3170_s0 + $0x1c] sm:$0xf] }
  0x1d   :  { %2617 = vmatprep.mubr.msk.f32.mxu1 %vm2688_vm2, %v2687_v0  ;;  %2622 = vmatprep.mubr.msk.f32.mxu0 %vm2688_vm2, %v2687_v0 }
  0x1e   :  { %2618 = vmatmul.mubr.msk.f32.vlgmr.msra.gmra.mxu1 %vm16_vm1, %v2412_v29  ;;  %2625 = vmatprep.subr.mxu1 %v2687_v0 }
  0x1f   :  { %2623 = vmatmul.mubr.msk.f32.vlgmr.msra.gmra.mxu0 %vm16_vm1, %v2418_v30  ;;  %2630 = vmatprep.subr.mxu0 %v2687_v0  ;;  %v2386_v30 = vld [vmem:[%s3170_s0 + $0x20] sm:$0xf] }
  0x20   :  { %2626 = vmatpush3.msk.msra.mxu1 %vm20_vm0, %v2425_v31  ;;  %2631 = vmatpush3.msk.msra.mxu0 %vm20_vm0, %v2431_v32 }
  0x21   :  { %2627 = vmatprep.mubr.msk.f32.mxu1 %vm2688_vm2, %v2687_v0  ;;  %2632 = vmatprep.mubr.msk.f32.mxu0 %vm2688_vm2, %v2687_v0 }
  0x22   :  { %2628 = vmatmul.mubr.msk.f32.vlgmr.msra.gmra.mxu1 %vm16_vm1, %v2424_v33  ;;  %2635 = vmatprep.subr.mxu1 %v2687_v0 }
  0x23   :  { %2633 = vmatmul.mubr.msk.f32.vlgmr.msra.gmra.mxu0 %vm16_vm1, %v2430_v34  ;;  %2640 = vmatprep.subr.mxu0 %v2687_v0 }
  0x24   :  { %2636 = vmatpush3.msk.msra.mxu1 %vm20_vm0, %v2437_v35  ;;  %2641 = vmatpush3.msk.msra.mxu0 %vm20_vm0, %v2443_v36 }
  0x25   :  { %2637 = vmatprep.mubr.msk.f32.mxu1 %vm2688_vm2, %v2687_v0  ;;  %2642 = vmatprep.mubr.msk.f32.mxu0 %vm2688_vm2, %v2687_v0 }
  0x26   :  { %2638 = vmatmul.mubr.msk.f32.vlgmr.msra.gmra.mxu1 %vm16_vm1, %v2436_v37  ;;  %2645 = vmatprep.subr.mxu1 %v2687_v0  ;;  %v2392_v37 = vld [vmem:[%s3170_s0 + $0x24] sm:$0xf] }
  0x27   :  { %2643 = vmatmul.mubr.msk.f32.vlgmr.msra.gmra.mxu0 %vm16_vm1, %v2442_v38  ;;  %2650 = vmatprep.subr.mxu0 %v2687_v0 }
  0x28   :  { %2646 = vmatpush3.msk.msra.mxu1 %vm20_vm0, %v2449_v39  ;;  %2651 = vmatpush3.msk.msra.mxu0 %vm20_vm0, %v2455_v40  ;;  %v2398_v40 = vld [vmem:[%s3170_s0 + $0x28] sm:$0xf] }
  0x29   :  { %2647 = vmatprep.mubr.msk.f32.mxu1 %vm2688_vm2, %v2687_v0  ;;  %2652 = vmatprep.mubr.msk.f32.mxu0 %vm2688_vm2, %v2687_v0 }
  0x2a   :  { %2648 = vmatmul.mubr.msk.f32.vlgmr.msra.gmra.mxu1 %vm16_vm1, %v2448_v41  ;;  %2655 = vmatprep.subr.mxu1 %v2687_v0 }
  0x2b   :  { %2653 = vmatmul.mubr.msk.f32.vlgmr.msra.gmra.mxu0 %vm16_vm1, %v2454_v42  ;;  %2660 = vmatprep.subr.mxu0 %v2687_v0 }
  0x2c   :  { %2656 = vmatpush3.msk.msra.mxu1 %vm20_vm0, %v2461_v43  ;;  %2661 = vmatpush3.msk.msra.mxu0 %vm20_vm0, %v2467_v44 }
  0x2d   :  { %2657 = vmatprep.mubr.msk.f32.mxu1 %vm2688_vm2, %v2687_v0  ;;  %2662 = vmatprep.mubr.msk.f32.mxu0 %vm2688_vm2, %v2687_v0 }
  0x2e   :  { %2658 = vmatmul.mubr.msk.f32.vlgmr.msra.gmra.mxu1 %vm16_vm1, %v2460_v45  ;;  %2665 = vmatprep.subr.mxu1 %v2687_v0 }
  0x2f   :  { %2663 = vmatmul.mubr.msk.f32.vlgmr.msra.gmra.mxu0 %vm16_vm1, %v2466_v46  ;;  %2670 = vmatprep.subr.mxu0 %v2687_v0 }
  0x30   :  { %2666 = vmatpush3.msk.msra.mxu1 %vm20_vm0, %v2473_v47  ;;  %2671 = vmatpush3.msk.msra.mxu0 %vm20_vm0, %v2479_v48  ;;  %v2404_v47 = vld [vmem:[%s3170_s0 + $0x2c] sm:$0xf] }
  0x31   :  { %2667 = vmatprep.mubr.msk.f32.mxu1 %vm2688_vm2, %v2687_v0  ;;  %2672 = vmatprep.mubr.msk.f32.mxu0 %vm2688_vm2, %v2687_v0 }
  0x32   :  { %2668 = vmatmul.mubr.msk.f32.vlgmr.msra.gmra.mxu1 %vm16_vm1, %v2472_v49  ;;  %2675 = vmatprep.subr.mxu1 %v2687_v0 }
  0x33   :  { %2673 = vmatmul.mubr.msk.f32.vlgmr.msra.gmra.mxu0 %vm16_vm1, %v2478_v50  ;;  %2680 = vmatprep.subr.mxu0 %v2687_v0  ;;  %v2410_v50 = vld [vmem:[%s3170_s0 + $0x30] sm:$0xf] }
  0x34   :  { %2676 = vmatpush3.msk.msra.mxu1 %vm20_vm0, %v2485_v51  ;;  %2681 = vmatpush3.msk.msra.mxu0 %vm20_vm0, %v2491_v52 }
  0x35   :  { %2677 = vmatprep.mubr.msk.f32.mxu1 %vm2688_vm2, %v2687_v0  ;;  %2682 = vmatprep.mubr.msk.f32.mxu0 %vm2688_vm2, %v2687_v0  ;;  %v2350_v0 = vld [vmem:[%s3170_s0 + $0x8] sm:$0xf] }
  0x36   :  { %2678 = vmatmul.mubr.msk.f32.vlgmr.msra.gmra.mxu1 %vm16_vm1, %v2484_v53 }
  0x37   :  { %2683 = vmatmul.mubr.msk.f32.vlgmr.msra.gmra.mxu0 %vm16_vm1, %v2490_v54 }
  0xc3   :  { %v90_v55 = vpop.f32.mrf.mxu0 }
  0xc4   :  { %v95_v57 = vmul.f32 2.0, %v90_v55 }
  0xc5   :  { %v2554_v58 = vpop.f32.mrf.mxu0 }
  0xc6   :  { %v96_v59 = vadd.f32 %v95_v57, %v94_v56  ;;  %v174_v60 = vpop.f32.mrf.mxu1  ;;  %v2416_v57 = vld [vmem:[%s3170_s0 + $0x34] sm:$0xf] }
  0xc7   :  { %v180_v62 = vmul.f32 2.0, %v174_v60  ;;  %v260_v63 = vpop.f32.mrf.mxu0  ;;  %v2422_v60 = vld [vmem:[%s3170_s0 + $0x38] sm:$0xf] }
  0xc8   :  { %97 = vst [vmem:[%s3171_s3] sm:$0xf] %v96_v59  ;;  %v266_v1 = vmul.f32 2.0, %v260_v63  ;;  %v2559_v2 = vpop.f32.mrf.mxu1 }
  0xc9   :  { %v181_v3 = vadd.f32 %v2344_v61, %v180_v62  ;;  %v2564_v4 = vpop.f32.mrf.mxu0 }
  0xca   :  { %v267_v5 = vadd.f32 %v2350_v0, %v266_v1  ;;  %v346_v6 = vpop.f32.mrf.mxu1 }
  0xcb   :  { %2345 = vst [vmem:[%s3171_s3 + $0x4] sm:$0xf] %v181_v3  ;;  %v352_v8 = vmul.f32 2.0, %v346_v6  ;;  %v432_v9 = vpop.f32.mrf.mxu0  ;;  %v2428_v3 = vld [vmem:[%s3170_s0 + $0x3c] sm:$0xf] }
  0xcc   :  { %2351 = vst [vmem:[%s3171_s3 + $0x8] sm:$0xf] %v267_v5  ;;  %v438_v11 = vmul.f32 2.0, %v432_v9  ;;  %v2569_v12 = vpop.f32.mrf.mxu1  ;;  %v2434_v6 = vld [vmem:[%s3170_s0 + $0x40] sm:$0xf] }
  0xcd   :  { %v353_v13 = vadd.f32 %v2356_v7, %v352_v8  ;;  %v2574_v14 = vpop.f32.mrf.mxu0 }
  0xce   :  { %v439_v15 = vadd.f32 %v2362_v10, %v438_v11  ;;  %v518_v16 = vpop.f32.mrf.mxu1 }
  0xcf   :  { %2357 = vst [vmem:[%s3171_s3 + $0xc] sm:$0xf] %v353_v13  ;;  %v524_v18 = vmul.f32 2.0, %v518_v16  ;;  %v604_v19 = vpop.f32.mrf.mxu0  ;;  %v2440_v13 = vld [vmem:[%s3170_s0 + $0x44] sm:$0xf] }
  0xd0   :  { %2363 = vst [vmem:[%s3171_s3 + $0x10] sm:$0xf] %v439_v15  ;;  %v610_v21 = vmul.f32 2.0, %v604_v19  ;;  %v2579_v22 = vpop.f32.mrf.mxu1  ;;  %v2446_v16 = vld [vmem:[%s3170_s0 + $0x48] sm:$0xf] }
  0xd1   :  { %v525_v23 = vadd.f32 %v2368_v17, %v524_v18  ;;  %v2584_v24 = vpop.f32.mrf.mxu0 }
  0xd2   :  { %v611_v25 = vadd.f32 %v2374_v20, %v610_v21  ;;  %v690_v26 = vpop.f32.mrf.mxu1 }
  0xd3   :  { %2369 = vst [vmem:[%s3171_s3 + $0x14] sm:$0xf] %v525_v23  ;;  %v696_v28 = vmul.f32 2.0, %v690_v26  ;;  %v776_v29 = vpop.f32.mrf.mxu0  ;;  %v2452_v23 = vld [vmem:[%s3170_s0 + $0x4c] sm:$0xf] }
  0xd4   :  { %2375 = vst [vmem:[%s3171_s3 + $0x18] sm:$0xf] %v611_v25  ;;  %v782_v31 = vmul.f32 2.0, %v776_v29  ;;  %v2589_v32 = vpop.f32.mrf.mxu1  ;;  %v2458_v26 = vld [vmem:[%s3170_s0 + $0x50] sm:$0xf] }
  0xd5   :  { %v697_v33 = vadd.f32 %v2380_v27, %v696_v28  ;;  %v2594_v34 = vpop.f32.mrf.mxu0 }
  0xd6   :  { %v783_v35 = vadd.f32 %v2386_v30, %v782_v31  ;;  %v862_v36 = vpop.f32.mrf.mxu1 }
  0xd7   :  { %2381 = vst [vmem:[%s3171_s3 + $0x1c] sm:$0xf] %v697_v33  ;;  %v868_v38 = vmul.f32 2.0, %v862_v36  ;;  %v948_v39 = vpop.f32.mrf.mxu0  ;;  %v2464_v33 = vld [vmem:[%s3170_s0 + $0x54] sm:$0xf] }
  0xd8   :  { %2387 = vst [vmem:[%s3171_s3 + $0x20] sm:$0xf] %v783_v35  ;;  %v954_v41 = vmul.f32 2.0, %v948_v39  ;;  %v2599_v42 = vpop.f32.mrf.mxu1  ;;  %v2470_v36 = vld [vmem:[%s3170_s0 + $0x58] sm:$0xf] }
  0xd9   :  { %v869_v43 = vadd.f32 %v2392_v37, %v868_v38  ;;  %v2604_v44 = vpop.f32.mrf.mxu0 }
  0xda   :  { %v955_v45 = vadd.f32 %v2398_v40, %v954_v41  ;;  %v1034_v46 = vpop.f32.mrf.mxu1 }
  0xdb   :  { %2393 = vst [vmem:[%s3171_s3 + $0x24] sm:$0xf] %v869_v43  ;;  %v1040_v48 = vmul.f32 2.0, %v1034_v46  ;;  %v1120_v49 = vpop.f32.mrf.mxu0  ;;  %v2476_v43 = vld [vmem:[%s3170_s0 + $0x5c] sm:$0xf] }
  0xdc   :  { %2399 = vst [vmem:[%s3171_s3 + $0x28] sm:$0xf] %v955_v45  ;;  %v1126_v51 = vmul.f32 2.0, %v1120_v49  ;;  %v2609_v52 = vpop.f32.mrf.mxu1  ;;  %v2482_v46 = vld [vmem:[%s3170_s0 + $0x60] sm:$0xf] }
  0xdd   :  { %v1041_v53 = vadd.f32 %v2404_v47, %v1040_v48  ;;  %v2614_v54 = vpop.f32.mrf.mxu0 }
  0xde   :  { %v1127_v55 = vadd.f32 %v2410_v50, %v1126_v51  ;;  %v1206_v56 = vpop.f32.mrf.mxu1 }
  0xdf   :  { %2405 = vst [vmem:[%s3171_s3 + $0x2c] sm:$0xf] %v1041_v53  ;;  %v1212_v58 = vmul.f32 2.0, %v1206_v56  ;;  %v1292_v59 = vpop.f32.mrf.mxu0  ;;  %v2488_v53 = vld [vmem:[%s3170_s0 + $0x64] sm:$0xf] }
  0xe0   :  { %2411 = vst [vmem:[%s3171_s3 + $0x30] sm:$0xf] %v1127_v55  ;;  %v1298_v61 = vmul.f32 2.0, %v1292_v59  ;;  %v2619_v62 = vpop.f32.mrf.mxu1  ;;  %v2494_v56 = vld [vmem:[%s3170_s0 + $0x68] sm:$0xf] }
  0xe1   :  { %v1213_v63 = vadd.f32 %v2416_v57, %v1212_v58  ;;  %v2624_v0 = vpop.f32.mrf.mxu0 }
  0xe2   :  { %v1299_v1 = vadd.f32 %v2422_v60, %v1298_v61  ;;  %v1378_v2 = vpop.f32.mrf.mxu1 }
  0xe3   :  { %2417 = vst [vmem:[%s3171_s3 + $0x34] sm:$0xf] %v1213_v63  ;;  %v1384_v4 = vmul.f32 2.0, %v1378_v2  ;;  %v1464_v5 = vpop.f32.mrf.mxu0 }
  0xe4   :  { %2423 = vst [vmem:[%s3171_s3 + $0x38] sm:$0xf] %v1299_v1  ;;  %v1470_v7 = vmul.f32 2.0, %v1464_v5  ;;  %v2629_v8 = vpop.f32.mrf.mxu1 }
  0xe5   :  { %v1385_v9 = vadd.f32 %v2428_v3, %v1384_v4  ;;  %v2634_v10 = vpop.f32.mrf.mxu0 }
  0xe6   :  { %v1471_v11 = vadd.f32 %v2434_v6, %v1470_v7  ;;  %v1550_v12 = vpop.f32.mrf.mxu1 }
  0xe7   :  { %2429 = vst [vmem:[%s3171_s3 + $0x3c] sm:$0xf] %v1385_v9  ;;  %v1556_v14 = vmul.f32 2.0, %v1550_v12  ;;  %v1636_v15 = vpop.f32.mrf.mxu0 }
  0xe8   :  { %2435 = vst [vmem:[%s3171_s3 + $0x40] sm:$0xf] %v1471_v11  ;;  %v1642_v17 = vmul.f32 2.0, %v1636_v15  ;;  %v2639_v18 = vpop.f32.mrf.mxu1 }
  0xe9   :  { %v1557_v19 = vadd.f32 %v2440_v13, %v1556_v14  ;;  %v2644_v20 = vpop.f32.mrf.mxu0 }
  0xea   :  { %v1643_v21 = vadd.f32 %v2446_v16, %v1642_v17  ;;  %v1722_v22 = vpop.f32.mrf.mxu1 }
  0xeb   :  { %2441 = vst [vmem:[%s3171_s3 + $0x44] sm:$0xf] %v1557_v19  ;;  %v1728_v24 = vmul.f32 2.0, %v1722_v22  ;;  %v1808_v25 = vpop.f32.mrf.mxu0 }
  0xec   :  { %2447 = vst [vmem:[%s3171_s3 + $0x48] sm:$0xf] %v1643_v21  ;;  %v1814_v27 = vmul.f32 2.0, %v1808_v25  ;;  %v2649_v28 = vpop.f32.mrf.mxu1 }
  0xed   :  { %v1729_v29 = vadd.f32 %v2452_v23, %v1728_v24  ;;  %v2654_v30 = vpop.f32.mrf.mxu0 }
  0xee   :  { %v1815_v31 = vadd.f32 %v2458_v26, %v1814_v27  ;;  %v1894_v32 = vpop.f32.mrf.mxu1 }
  0xef   :  { %2453 = vst [vmem:[%s3171_s3 + $0x4c] sm:$0xf] %v1729_v29  ;;  %v1900_v34 = vmul.f32 2.0, %v1894_v32  ;;  %v1980_v35 = vpop.f32.mrf.mxu0 }
  0xf0   :  { %2459 = vst [vmem:[%s3171_s3 + $0x50] sm:$0xf] %v1815_v31  ;;  %v1986_v37 = vmul.f32 2.0, %v1980_v35  ;;  %v2659_v38 = vpop.f32.mrf.mxu1 }
  0xf1   :  { %v1901_v39 = vadd.f32 %v2464_v33, %v1900_v34  ;;  %v2664_v40 = vpop.f32.mrf.mxu0 }
  0xf2   :  { %v1987_v41 = vadd.f32 %v2470_v36, %v1986_v37  ;;  %v2066_v42 = vpop.f32.mrf.mxu1 }
  0xf3   :  { %2465 = vst [vmem:[%s3171_s3 + $0x54] sm:$0xf] %v1901_v39  ;;  %v2072_v44 = vmul.f32 2.0, %v2066_v42  ;;  %v2152_v45 = vpop.f32.mrf.mxu0 }
  0xf4   :  { %2471 = vst [vmem:[%s3171_s3 + $0x58] sm:$0xf] %v1987_v41  ;;  %v2158_v47 = vmul.f32 2.0, %v2152_v45  ;;  %v2669_v48 = vpop.f32.mrf.mxu1 }
  0xf5   :  { %v2073_v49 = vadd.f32 %v2476_v43, %v2072_v44  ;;  %v2674_v50 = vpop.f32.mrf.mxu0 }
  0xf6   :  { %v2159_v51 = vadd.f32 %v2482_v46, %v2158_v47  ;;  %v2238_v52 = vpop.f32.mrf.mxu1 }
  0xf7   :  { %2477 = vst [vmem:[%s3171_s3 + $0x5c] sm:$0xf] %v2073_v49  ;;  %v2244_v54 = vmul.f32 2.0, %v2238_v52  ;;  %v2324_v55 = vpop.f32.mrf.mxu0 }
  0xf8   :  { %2483 = vst [vmem:[%s3171_s3 + $0x60] sm:$0xf] %v2159_v51  ;;  %v2330_v57 = vmul.f32 2.0, %v2324_v55  ;;  %v2679_v58 = vpop.f32.mrf.mxu1 }
  0xf9   :  { %v2245_v59 = vadd.f32 %v2488_v53, %v2244_v54  ;;  %v2684_v60 = vpop.f32.mrf.mxu0 }
  0xfa   :  { %v2331_v61 = vadd.f32 %v2494_v56, %v2330_v57 }
  0xfb   :  { %2489 = vst [vmem:[%s3171_s3 + $0x64] sm:$0xf] %v2245_v59 }
  0xfc   :  { %2495 = vst [vmem:[%s3171_s3 + $0x68] sm:$0xf] %v2331_v61 }

// kernel: fwd.3
= control target key start
LH: loop header
LB: loop body
LE: loop exit
PB: predicated region body
PF: predicated region fallthrough
CT: control target
= control target key end

     0   :  { %s1508_s12 = smov 0   ;;  %s1510_s13 = smov 0   ;;  %s2180_s0 = inlined_call_operand.vmem [shape: f32[2,8,3,8,18,4], index: 0, kind: input, shape index: {}]   ;;  %s2181_s1 = inlined_call_operand.vmem [shape: f32[3,36,128], index: 1, kind: input, shape index: {}]   ;;  %s2182_s2 = inlined_call_operand.vmem [shape: f32[1,128], index: 2, kind: input, shape index: {}]   ;;  %s2183_s3 = inlined_call_operand.vmem [shape: f32[2,6,3,96,128], index: 3, kind: output, shape index: {}]  }
   0x1   :  { %s1512_s14 = smov 0   ;;  %s1514_s15 = smov 0  }
   0x2   :  { %s1516_s16 = smov 0   ;;  %s1518_s17 = smov 0  }
   0x3   :  { %s1520_s18 = smov 0   ;;  %s1522_s19 = smov 0  }
   0x4   :  { %s1524_s20 = smov 0  }
   0x5 LB: > { %s31_s21 = sadd.s32 1, %s1462_s16  ;;  %s38_s22 = sadd.s32 1, %s1466_s17  ;;  %s1478_s20 = sphi %s1524_s20, %s13_s20   ;;  %s1474_s19 = sphi %s1522_s19, %s2191_s19   ;;  %s1470_s18 = sphi %s1520_s18, %s2190_s18   ;;  %s1466_s17 = sphi %s1518_s17, %s2189_s17   ;;  %s1462_s16 = sphi %s1516_s16, %s2188_s16   ;;  %s1458_s15 = sphi %s1514_s15, %s2187_s15   ;;  %s1454_s14 = sphi %s1512_s14, %s2186_s14   ;;  %s1450_s13 = sphi %s1510_s13, %s2185_s13   ;;  %s1446_s12 = sphi %s1508_s12, %s2184_s12  }
   0x6   : > { %p32_p0 = scmp.ge.s32.totalorder %s31_s21, 3  ;;  %p1246_p1 = scmp.ge.s32.totalorder %s1478_s20, 1 }
   0x7   : > { %p209_p2 = scmp.lt.s32.totalorder %s1478_s20, 109  ;;  %s42_s23 = sadd.s32 1, %s1470_s18 }
   0x8   : > { %s2193_s21 = smov (%p32_p0, %s31_s21), 0  ;;  %s2195_s22 = smov (!%p32_p0, %s38_s22), %s1466_s17 }
   0x9   : > { %p40_p3 = scmp.ge.s32.totalorder %s2195_s22, 3  ;;  %p210_p4 = pnand %p1246_p1, %p209_p2 }
   0xa   : > { %s46_s24 = sadd.s32 1, %s1474_s19  ;;  %s260_s25 = sadd.s32 (!%p210_p4), %s1446_s12, %s1454_s14 }
   0xb   : > { %s2197_s22 = smov (%p40_p3, %s2195_s22), 0  ;;  %s2199_s23 = smov (!%p40_p3, %s42_s23), %s1470_s18 }
   0xc   : > { %p44_p5 = scmp.ge.s32.totalorder %s2199_s23, 6  ;;  %p261_p7 = scmp.lt.s32.totalorder (!%p210_p4), %s1458_s15, 1 }
   0xd   : > { %213 = sbr.rel (%p210_p4) target bundleno = 554 (0x22a), region = 32  ;;  %p263_p8 = scmp.lt.s32.totalorder (!%p210_p4), %s260_s25, 7 }
   0xe   : > { %s2201_s23 = smov (%p44_p5, %s2199_s23), 0  ;;  %s2203_s24 = smov (!%p44_p5, %s46_s24), %s1474_s19 }
   0xf   : > { %p48_p6 = scmp.ge.s32.totalorder %s2203_s24, 2  ;;  %p265_p9 = scmp.lt.s32.totalorder (!%p210_p4), %s1450_s13, 2 }
  0x10   : > { %p284_p10 = scmp.lt.s32.totalorder (!%p210_p4), %s1454_s14, 5  ;;  %s1486_s6 = smov (!%p210_p4), 28  }
  0x11   : > { %s2205_s24 = smov (%p48_p6, %s2203_s24), 0  ;;  %s820_s7 = smul.u32 (!%p210_p4), 40, %s1446_s12 }
  0x12   : > { %s2207_s15 = smov (!%p261_p7, %s1458_s15), 1  ;;  %s2209_s25 = smov (!%p263_p8, %s260_s25), 7  ;;  %vm340_vm0 = vcmask 1046528   ;;  %vm371_vm1 = vcmask 1045504   ;;  %vm864_vm2 = vcmask 1043456   ;;  %vm716_vm3 = vcmask 31744  }
  0x13   : > { %s2211_s13 = smov (!%p265_p9, %s1450_s13), 2  ;;  %s1323_s26 = smul.u32 72, %s2209_s25  ;;  %vm729_vm4 = vcmask 64512   ;;  %vm742_vm5 = vcmask 97280   ;;  %vm755_vm6 = vcmask 130048   ;;  %vm768_vm7 = vcmask 162816  }
  0x14   : > { %s1322_s27 = smul.u32 24, %s2211_s13  ;;  %s2213_s14 = smov (!%p284_p10, %s1454_s14), 5  ;;  %vm781_vm8 = vcmask 195584   ;;  %vm794_vm9 = vcmask 228352   ;;  %vm807_vm10 = vcmask 261120   ;;  %vm827_vm11 = vcmask 293888  }
  0x15   : > { %s1324_s28 = smul.u32 576, %s2207_s15  ;;  %p1262_p11 = scmp.ne.s32.totalorder %s1446_s12, 0 }
  0x16   : > { %s269_s29 = sadd.s32 %s1323_s26, %s1322_s27  ;;  %s1325_s5 = smul.u32 12, %s2211_s13 }
  0x17   : > { %s271_s30 = sadd.s32 %s1324_s28, %s269_s29  ;;  %s1327_s9 = smul.u32 216, %s2207_s15 }
  0x18   : > { %s1247_s4 = sshll.u32 %s271_s30, 3  ;;  %s1326_s10 = smul.u32 36, %s2213_s14 }
  0x19   : > { %s1583_s8 = scalar_lea.vmem %s2180_s0, %s1247_s4  ;;  %s1480_s13 = smov 4  }
  0x1a   : > { %v1588_v0 = vld [vmem:[%s1583_s8 + $0x8] sm:$0xff]  ;;  %v300_v1 = vld [vmem:[%s1583_s8 + $0x10] sm:$0x3]  ;;  %v1592_v2 = vld [vmem:[%s1583_s8] sm:$0xff]  ;;  %s293_s11 = sadd.s32 %s1326_s10, %s1325_s5  ;;  %s1481_s28 = smov 8  }
  0x1b   : > { %v342_v3 = vrot.slane %v1588_v0, 1  ;;  %v344_v4 = vrot.slane %v300_v1, 1  ;;  %v341_v5 = vrot.slane %v1592_v2, 1  ;;  %v1597_v6 = vld [vmem:[%s1583_s8 + $0x50] sm:$0xff]  ;;  %v309_v7 = vld [vmem:[%s1583_s8 + $0x58] sm:$0x3]  ;;  %s295_s14 = sadd.s32 %s1327_s9, %s293_s11  ;;  %s821_s10 = scalar_lea.vmem %s2181_s1, %s820_s7 }
  0x1c   : > { %v357_v8 = vrot.slane %v1597_v6, 1  ;;  %v359_v9 = vrot.slane %v309_v7, 1  ;;  %v1602_v10 = vld [vmem:[%s1583_s8 + $0x48] sm:$0xff]  ;;  %v388_v14 = vrot.slane %v1597_v6, 2  ;;  %v372_v15 = vrot.slane %v1592_v2, 2  ;;  %s1248_s15 = sshll.u32 %s295_s14, 3 }
  0x1d   : > { %v345_v11 = vsel %vm340_vm0, %v342_v3, %v344_v4  ;;  %v343_v12 = vsel %vm340_vm0, %v341_v5, %v342_v3  ;;  %v356_v13 = vrot.slane %v1602_v10, 1  ;;  %v387_v18 = vrot.slane %v1602_v10, 2  ;;  %s1622_s27 = scalar_lea.vmem %s2183_s3, %s1248_s15  ;;  %v1629_v21 = vld [vmem:[%s1583_s8 + $0x80] sm:$0xff]  ;;  %v1636_v25 = vld [vmem:[%s1583_s8 + $0x38] sm:$0xff]  ;;  %v315_v26 = vld [vmem:[%s1583_s8 + $0x88] sm:$0x3] }
  0x1e   : > { %430 = vrot.lane.b32.xlu1 %v345_v11, %s1480_s13  ;;  %428 = vrot.lane.b32.xlu0 %v343_v12, %s1480_s13  ;;  %v1612_v16 = vsel %vm340_vm0, %v357_v8, %v359_v9  ;;  %v373_v19 = vrot.slane %v1588_v0, 2  ;;  %v390_v20 = vrot.slane %v309_v7, 2  ;;  %v375_v24 = vrot.slane %v300_v1, 2  ;;  %v306_v27 = vld [vmem:[%s1583_s8 + $0x40] sm:$0x3]  ;;  %v1650_v34 = vld [vmem:[%s1583_s8 + $0x98] sm:$0xff] }
  0x1f   : > { %v1615_v17 = vsel %vm340_vm0, %v356_v13, %v357_v8  ;;  %v1632_v22 = vsel %vm371_vm1, %v387_v18, %v388_v14  ;;  %v367_v28 = vrot.slane %v1629_v21, 1  ;;  %v352_v29 = vrot.slane %v1636_v25, 1  ;;  %v1664_v39 = vld [vmem:[%s1583_s8 + $0x90] sm:$0xff]  ;;  %v318_v45 = vld [vmem:[%s1583_s8 + $0xa0] sm:$0x3]  ;;  %v1682_v47 = vld [vmem:[%s1583_s8 + $0x18] sm:$0xff] }
  0x20   : > { %v374_v23 = vsel %vm371_vm1, %v372_v15, %v373_v19  ;;  %v369_v30 = vrot.slane %v315_v26, 1  ;;  %v354_v31 = vrot.slane %v306_v27, 1  ;;  %v1646_v32 = vsel %vm371_vm1, %v388_v14, %v390_v20  ;;  %v1679_v46 = vld [vmem:[%s1583_s8 + $0x60] sm:$0xff]  ;;  %v1685_v48 = vld [vmem:[%s1583_s8 + $0x68] sm:$0xff]  ;;  %s1482_s29 = smov 12   ;;  %s1483_s30 = smov 16  }
  0x21   : > { %v376_v33 = vsel %vm371_vm1, %v373_v19, %v375_v24  ;;  %v398_v37 = vrot.slane %v1629_v21, 2  ;;  %v400_v38 = vrot.slane %v315_v26, 2  ;;  %v383_v40 = vrot.slane %v1636_v25, 2  ;;  %v1693_v51 = vld [vmem:[%s1583_s8 + $0x20] sm:$0xff]  ;;  %v312_v63 = vld [vmem:[%s1583_s8 + $0x70] sm:$0x3] }
  0x22   : > { %442 = vrot.lane.b32.xlu1 %v1612_v16, %s1480_s13  ;;  %440 = vrot.lane.b32.xlu0 %v1615_v17, %s1480_s13  ;;  %v1655_v35 = vsel %vm340_vm0, %v367_v28, %v369_v30  ;;  %v1660_v36 = vsel %vm340_vm0, %v352_v29, %v354_v31  ;;  %v385_v41 = vrot.slane %v306_v27, 2  ;;  %v405_v42 = vrot.slane %v1664_v39, 1  ;;  %v303_v1 = vld [vmem:[%s1583_s8 + $0x28] sm:$0x3]  ;;  %s1484_s4 = smov 20   ;;  %v1759_v26 = vld [vmem:[%s1583_s8 + $0xb0] sm:$0xff] }
  0x23   : > { %v1674_v43 = vsel %vm371_vm1, %v398_v37, %v400_v38  ;;  %v406_v44 = vrot.slane %v1650_v34, 1  ;;  %v408_v50 = vrot.slane %v318_v45, 1  ;;  %v361_v54 = vrot.slane %v1679_v46, 1  ;;  %v321_v38 = vld [vmem:[%s1583_s8 + $0xb8] sm:$0x3]  ;;  %s1485_s5 = smov 24  }
  0x24   : > { %v1690_v49 = vsel %vm371_vm1, %v383_v40, %v385_v41  ;;  %v362_v55 = vrot.slane %v1685_v48, 1  ;;  %v346_v56 = vrot.slane %v1682_v47, 1  ;;  %v347_v57 = vrot.slane %v1693_v51, 1  ;;  %v1777_v41 = vld [vmem:[%s1583_s8 + $0x78] sm:$0xff]  ;;  %s1487_s11 = smov 32  }
  0x25   : > { %v1696_v52 = vsel %vm340_vm0, %v405_v42, %v406_v44  ;;  %v1699_v53 = vsel %vm340_vm0, %v406_v44, %v408_v50  ;;  %v410_v58 = vrot.slane %v1664_v39, 2  ;;  %v411_v59 = vrot.slane %v1650_v34, 2  ;;  %v1780_v42 = vld [vmem:[%s1583_s8 + $0x30] sm:$0xff] }
  0x26   : > { %476 = vrot.lane.b32.xlu1 %v1632_v22, %s1481_s28  ;;  %464 = vrot.lane.b32.xlu0 %v374_v23, %s1481_s28  ;;  %v1719_v61 = vsel %vm340_vm0, %v361_v54, %v362_v55  ;;  %v348_v62 = vsel %vm340_vm0, %v346_v56, %v347_v57  ;;  %v364_v3 = vrot.slane %v312_v63, 1  ;;  %v349_v4 = vrot.slane %v303_v1, 1  ;;  %v1755_v23 = vld [vmem:[%s1583_s8 + $0xa8] sm:$0xff] }
  0x27   : > { %v1712_v60 = vsel %vm371_vm1, %v410_v58, %v411_v59  ;;  %v392_v5 = vrot.slane %v1679_v46, 2  ;;  %v393_v7 = vrot.slane %v1685_v48, 2  ;;  %v377_v8 = vrot.slane %v1682_v47, 2 }
  0x28   : > { %v1734_v9 = vsel %vm340_vm0, %v362_v55, %v364_v3  ;;  %v350_v11 = vsel %vm340_vm0, %v347_v57, %v349_v4  ;;  %v378_v12 = vrot.slane %v1693_v51, 2  ;;  %v413_v13 = vrot.slane %v318_v45, 2  ;;  %v825_v3 = vld [vmem:[%s821_s10 + $0x18] sm:$0xff]  ;;  %v824_v4 = vld [vmem:[%s821_s10 + $0x10] sm:$0xff] }
  0x29   : > { %v1745_v15 = vsel %vm371_vm1, %v392_v5, %v393_v7  ;;  %v395_v19 = vrot.slane %v312_v63, 2  ;;  %v380_v20 = vrot.slane %v303_v1, 2  ;;  %v418_v24 = vrot.slane %v1755_v23, 1  ;;  %v826_v1 = vld [vmem:[%s821_s10 + $0x20] sm:$0xf] }
  0x2a   : > { %478 = vrot.lane.b32.xlu1 %v1646_v32, %s1481_s28  ;;  %466 = vrot.lane.b32.xlu0 %v376_v33, %s1481_s28  ;;  %v1739_v14 = vsel %vm371_vm1, %v411_v59, %v413_v13  ;;  %v379_v18 = vsel %vm371_vm1, %v377_v8, %v378_v12  ;;  %v419_v27 = vrot.slane %v1759_v26, 1  ;;  %v421_v44 = vrot.slane %v321_v38, 1  ;;  %v823_v8 = vld [vmem:[%s821_s10 + $0x8] sm:$0xff] }
  0x2b   : > { %v1766_v30 = vsel %vm371_vm1, %v393_v7, %v395_v19  ;;  %v381_v31 = vsel %vm371_vm1, %v378_v12, %v380_v20  ;;  %v423_v45 = vrot.slane %v1755_v23, 2  ;;  %v424_v50 = vrot.slane %v1759_v26, 2  ;;  %1284 = vmatprep.subr.msk.mxu0 %vm864_vm2, %v826_v1  ;;  %1312 = vmatprep.subr.msk.mxu1 %vm864_vm2, %v826_v1 }
  0x2c   : > { %v1770_v33 = vsel %vm340_vm0, %v418_v24, %v419_v27  ;;  %v1785_v54 = vsel %vm340_vm0, %v419_v27, %v421_v44  ;;  %v426_v56 = vrot.slane %v321_v38, 2  ;;  %v366_v58 = vrot.slane %v1777_v41, 1  ;;  %1285 = vmatpush3.msk.msra.mxu0 %vm864_vm2, %v826_v1  ;;  %1317 = vmatpush3.msk.msra.mxu1 %vm864_vm2, %v826_v1 }
  0x2d   : > { %v1792_v55 = vsel %vm371_vm1, %v423_v45, %v424_v50  ;;  %v351_v59 = vrot.slane %v1780_v42, 1  ;;  %1286 = vmatprep.subr.mxu0 %v825_v3  ;;  %1313 = vmatprep.subr.mxu1 %v825_v3 }
  0x2e   : > { %512 = vrot.lane.b32.xlu1 %v1679_v46, %s1482_s29  ;;  %500 = vrot.lane.b32.xlu0 %v1682_v47, %s1482_s29  ;;  %v1798_v57 = vsel %vm371_vm1, %v424_v50, %v426_v56 }
  0x2f   : > { %v353_v63 = vsel %vm340_vm0, %v351_v59, %v352_v29  ;;  %v382_v29 = vrot.slane %v1780_v42, 2  ;;  %1287 = vmatpush3.msra.mxu0 %v825_v3  ;;  %1318 = vmatpush3.msra.mxu1 %v825_v3 }
  0x30   : > { %1288 = vmatprep.subr.mxu0 %v824_v4  ;;  %1314 = vmatprep.subr.mxu1 %v824_v4 }
  0x31   : > { %v384_v7 = vsel %vm371_vm1, %v382_v29, %v383_v40  ;;  %1289 = vmatpush3.msra.mxu0 %v824_v4  ;;  %1319 = vmatpush3.msra.mxu1 %v824_v4 }
  0x32   : > { %514 = vrot.lane.b32.xlu1 %v1685_v48, %s1482_s29  ;;  %502 = vrot.lane.b32.xlu0 %v1693_v51, %s1482_s29 }
  0x33   : > { %1290 = vmatprep.subr.mxu0 %v823_v8  ;;  %1315 = vmatprep.subr.mxu1 %v823_v8 }
  0x34   : > { %1291 = vmatpush3.msra.mxu0 %v823_v8  ;;  %1320 = vmatpush3.msra.mxu1 %v823_v8 }
  0x36   : > { %548 = vrot.lane.b32.xlu1 %v1719_v61, %s1483_s30  ;;  %536 = vrot.lane.b32.xlu0 %v348_v62, %s1483_s30 }
  0x3a   : > { %444 = vrot.lane.b32.xlu1 %v1719_v61, %s1480_s13  ;;  %432 = vrot.lane.b32.xlu0 %v348_v62, %s1480_s13  ;;  %v368_v62 = vsel %vm340_vm0, %v366_v58, %v367_v28  ;;  %v397_v28 = vrot.slane %v1777_v41, 2 }
  0x3c   : > { %v399_v5 = vsel %vm371_vm1, %v397_v28, %v398_v37  ;;  %v822_v37 = vld [vmem:[%s821_s10] sm:$0xff] }
  0x3d   : > { %1292 = vmatprep.subr.mxu0 %v822_v37  ;;  %1316 = vmatprep.subr.mxu1 %v822_v37 }
  0x3e   : > { %550 = vrot.lane.b32.xlu1 %v1734_v9, %s1483_s30  ;;  %538 = vrot.lane.b32.xlu0 %v350_v11, %s1483_s30 }
  0x3f   : > { %1293 = vmatpush3.msra.mxu0 %v822_v37  ;;  %1321 = vmatpush3.msra.mxu1 %v822_v37 }
  0x42   : > { %584 = vrot.lane.b32.xlu1 %v1745_v15, %s1484_s4  ;;  %572 = vrot.lane.b32.xlu0 %v379_v18, %s1484_s4 }
  0x46   : > { %446 = vrot.lane.b32.xlu1 %v1734_v9, %s1480_s13  ;;  %434 = vrot.lane.b32.xlu0 %v350_v11, %s1480_s13 }
  0x4a   : > { %480 = vrot.lane.b32.xlu1 %v1745_v15, %s1481_s28  ;;  %468 = vrot.lane.b32.xlu0 %v379_v18, %s1481_s28 }
  0x4e   : > { %586 = vrot.lane.b32.xlu1 %v1766_v30, %s1484_s4  ;;  %574 = vrot.lane.b32.xlu0 %v381_v31, %s1484_s4 }
  0x52   : > { %620 = vrot.lane.b32.xlu1 %v1777_v41, %s1485_s5  ;;  %608 = vrot.lane.b32.xlu0 %v1780_v42, %s1485_s5 }
  0x56   : > { %482 = vrot.lane.b32.xlu1 %v1766_v30, %s1481_s28  ;;  %470 = vrot.lane.b32.xlu0 %v381_v31, %s1481_s28 }
  0x5a   : > { %516 = vrot.lane.b32.xlu1 %v1777_v41, %s1482_s29  ;;  %504 = vrot.lane.b32.xlu0 %v1780_v42, %s1482_s29 }
  0x5e   : > { %622 = vrot.lane.b32.xlu1 %v1629_v21, %s1485_s5  ;;  %610 = vrot.lane.b32.xlu0 %v1636_v25, %s1485_s5 }
  0x62   : > { %656 = vrot.lane.b32.xlu1 %v368_v62, %s1486_s6  ;;  %644 = vrot.lane.b32.xlu0 %v353_v63, %s1486_s6 }
  0x66   : > { %518 = vrot.lane.b32.xlu1 %v1629_v21, %s1482_s29  ;;  %506 = vrot.lane.b32.xlu0 %v1636_v25, %s1482_s29 }
  0x6a   : > { %552 = vrot.lane.b32.xlu1 %v368_v62, %s1483_s30  ;;  %540 = vrot.lane.b32.xlu0 %v353_v63, %s1483_s30 }
  0x6e   : > { %658 = vrot.lane.b32.xlu1 %v1655_v35, %s1486_s6  ;;  %646 = vrot.lane.b32.xlu0 %v1660_v36, %s1486_s6 }
  0x72   : > { %692 = vrot.lane.b32.xlu1 %v399_v5, %s1487_s11  ;;  %680 = vrot.lane.b32.xlu0 %v384_v7, %s1487_s11 }
  0x76   : > { %448 = vrot.lane.b32.xlu1 %v368_v62, %s1480_s13  ;;  %436 = vrot.lane.b32.xlu0 %v353_v63, %s1480_s13 }
  0x7a   : > { %554 = vrot.lane.b32.xlu1 %v1655_v35, %s1483_s30  ;;  %542 = vrot.lane.b32.xlu0 %v1660_v36, %s1483_s30 }
  0x7e   : > { %588 = vrot.lane.b32.xlu1 %v399_v5, %s1484_s4  ;;  %576 = vrot.lane.b32.xlu0 %v384_v7, %s1484_s4 }
  0x82   : > { %694 = vrot.lane.b32.xlu1 %v1674_v43, %s1487_s11  ;;  %682 = vrot.lane.b32.xlu0 %v1690_v49, %s1487_s11 }
  0x86   : > { %450 = vrot.lane.b32.xlu1 %v1655_v35, %s1480_s13  ;;  %438 = vrot.lane.b32.xlu0 %v1660_v36, %s1480_s13 }
  0x8a   : > { %484 = vrot.lane.b32.xlu1 %v399_v5, %s1481_s28  ;;  %472 = vrot.lane.b32.xlu0 %v384_v7, %s1481_s28 }
  0x8e   : > { %590 = vrot.lane.b32.xlu1 %v1674_v43, %s1484_s4  ;;  %578 = vrot.lane.b32.xlu0 %v1690_v49, %s1484_s4 }
  0x90   : > { %v431_v40 = vpop.permute.xlu1 %430  ;;  %v429_v11 = vpop.permute.xlu0 %428 }
  0x91   : > { %v717_v12 = vsel %vm716_vm3, %v1592_v2, %v429_v11  ;;  %v718_v2 = vsel %vm716_vm3, %v1588_v0, %v431_v40 }
  0x92   : > { %624 = vrot.lane.b32.xlu1 %v1664_v39, %s1485_s5  ;;  %612 = vrot.lane.b32.xlu0 %v1602_v10, %s1485_s5 }
  0x94   : > { %v443_v35 = vpop.permute.xlu1 %442  ;;  %v441_v36 = vpop.permute.xlu0 %440 }
  0x95   : > { %v723_v13 = vsel %vm716_vm3, %v1602_v10, %v441_v36 }
  0x96   : > { %486 = vrot.lane.b32.xlu1 %v1674_v43, %s1481_s28  ;;  %474 = vrot.lane.b32.xlu0 %v1690_v49, %s1481_s28  ;;  %v724_v43 = vsel %vm716_vm3, %v1597_v6, %v443_v35 }
  0x98   : > { %v477_v18 = vpop.permute.xlu1 %476  ;;  %v465_v19 = vpop.permute.xlu0 %464 }
  0x99   : > { %v1877_v20 = vsel %vm729_vm4, %v723_v13, %v477_v18  ;;  %v1880_v24 = vsel %vm729_vm4, %v717_v12, %v465_v19 }
  0x9a   : > { %520 = vrot.lane.b32.xlu1 %v1664_v39, %s1482_s29  ;;  %508 = vrot.lane.b32.xlu0 %v1602_v10, %s1482_s29 }
  0x9c   : > { %v479_v49 = vpop.permute.xlu1 %478  ;;  %v467_v27 = vpop.permute.xlu0 %466 }
  0x9d   : > { %v737_v31 = vsel %vm729_vm4, %v724_v43, %v479_v49  ;;  %v731_v38 = vsel %vm729_vm4, %v718_v2, %v467_v27 }
  0x9e   : > { %626 = vrot.lane.b32.xlu1 %v1650_v34, %s1485_s5  ;;  %614 = vrot.lane.b32.xlu0 %v1597_v6, %s1485_s5 }
  0xa0   : > { %v1896_v39 = vpop.permute.xlu1 %512  ;;  %v1898_v10 = vpop.permute.xlu0 %500 }
  0xa2   : > { %660 = vrot.lane.b32.xlu1 %v1696_v52, %s1486_s6  ;;  %648 = vrot.lane.b32.xlu0 %v1615_v17, %s1486_s6 }
  0xa4   : > { %v515_v0 = vpop.permute.xlu1 %514  ;;  %v503_v44 = vpop.permute.xlu0 %502 }
  0xa5   : > { %v750_v45 = vsel %vm742_vm5, %v737_v31, %v515_v0  ;;  %v744_v50 = vsel %vm742_vm5, %v731_v38, %v503_v44 }
  0xa6   : > { %522 = vrot.lane.b32.xlu1 %v1650_v34, %s1482_s29  ;;  %510 = vrot.lane.b32.xlu0 %v1597_v6, %s1482_s29 }
  0xa8   : > { %v1910_v56 = vpop.permute.xlu1 %548  ;;  %v1912_v58 = vpop.permute.xlu0 %536 }
  0xaa   : > { %556 = vrot.lane.b32.xlu1 %v1696_v52, %s1483_s30  ;;  %544 = vrot.lane.b32.xlu0 %v1615_v17, %s1483_s30 }
  0xac   : > { %v445_v59 = vpop.permute.xlu1 %444  ;;  %v433_v62 = vpop.permute.xlu0 %432 }
  0xad   : > { %v725_v3 = vsel %vm716_vm3, %v1679_v46, %v445_v59  ;;  %v719_v4 = vsel %vm716_vm3, %v1682_v47, %v433_v62 }
  0xae   : > { %662 = vrot.lane.b32.xlu1 %v1699_v53, %s1486_s6  ;;  %650 = vrot.lane.b32.xlu0 %v1612_v16, %s1486_s6 }
  0xb0   : > { %v551_v6 = vpop.permute.xlu1 %550  ;;  %v539_v34 = vpop.permute.xlu0 %538 }
  0xb1   : > { %v1923_v63 = vsel %vm755_vm6, %v750_v45, %v551_v6  ;;  %v1926_v28 = vsel %vm755_vm6, %v744_v50, %v539_v34 }
  0xb2   : > { %696 = vrot.lane.b32.xlu1 %v1712_v60, %s1487_s11  ;;  %684 = vrot.lane.b32.xlu0 %v1632_v22, %s1487_s11 }
  0xb4   : > { %v1932_v17 = vpop.permute.xlu1 %584  ;;  %v1934_v52 = vpop.permute.xlu0 %572 }
  0xb6   : > { %558 = vrot.lane.b32.xlu1 %v1699_v53, %s1483_s30  ;;  %546 = vrot.lane.b32.xlu0 %v1612_v16, %s1483_s30 }
  0xb8   : > { %v447_v29 = vpop.permute.xlu1 %446  ;;  %v435_v1 = vpop.permute.xlu0 %434 }
  0xb9   : > { %v726_v37 = vsel %vm716_vm3, %v1685_v48, %v447_v29  ;;  %v720_v40 = vsel %vm716_vm3, %v1693_v51, %v435_v1 }
  0xba   : > { %592 = vrot.lane.b32.xlu1 %v1712_v60, %s1484_s4  ;;  %580 = vrot.lane.b32.xlu0 %v1632_v22, %s1484_s4 }
  0xbc   : > { %v481_v5 = vpop.permute.xlu1 %480  ;;  %v469_v7 = vpop.permute.xlu0 %468 }
  0xbd   : > { %v738_v53 = vsel %vm729_vm4, %v725_v3, %v481_v5  ;;  %v732_v16 = vsel %vm729_vm4, %v719_v4, %v469_v7 }
  0xbe   : > { %698 = vrot.lane.b32.xlu1 %v1739_v14, %s1487_s11  ;;  %686 = vrot.lane.b32.xlu0 %v1646_v32, %s1487_s11 }
  0xc0   : > { %v1954_v60 = vpop.permute.xlu1 %586  ;;  %v1956_v22 = vpop.permute.xlu0 %574 }
  0xc1   : > { %v776_v29 = vsel %vm768_vm7, %v1923_v63, %v1954_v60  ;;  %v770_v1 = vsel %vm768_vm7, %v1926_v28, %v1956_v22 }
  0xc2   : > { %594 = vrot.lane.b32.xlu1 %v1739_v14, %s1484_s4  ;;  %582 = vrot.lane.b32.xlu0 %v1646_v32, %s1484_s4 }
  0xc4   : > { %v621_v47 = vpop.permute.xlu1 %620  ;;  %v609_v8 = vpop.permute.xlu0 %608 }
  0xc6   : > { %628 = vrot.lane.b32.xlu1 %v1755_v23, %s1485_s5  ;;  %616 = vrot.lane.b32.xlu0 %v1679_v46, %s1485_s5 }
  0xc8   : > { %v483_v11 = vpop.permute.xlu1 %482  ;;  %v471_v35 = vpop.permute.xlu0 %470 }
  0xc9   : > { %v739_v14 = vsel %vm729_vm4, %v726_v37, %v483_v11  ;;  %v733_v32 = vsel %vm729_vm4, %v720_v40, %v471_v35 }
  0xca   : > { %630 = vrot.lane.b32.xlu1 %v1759_v26, %s1485_s5  ;;  %618 = vrot.lane.b32.xlu0 %v1685_v48, %s1485_s5 }
  0xcc   : > { %v517_v23 = vpop.permute.xlu1 %516  ;;  %v505_v46 = vpop.permute.xlu0 %504 }
  0xcd   : > { %v751_v36 = vsel %vm742_vm5, %v738_v53, %v517_v23  ;;  %v745_v12 = vsel %vm742_vm5, %v732_v16, %v505_v46 }
  0xce   : > { %664 = vrot.lane.b32.xlu1 %v1770_v33, %s1486_s6  ;;  %652 = vrot.lane.b32.xlu0 %v1719_v61, %s1486_s6 }
  0xd0   : > { %v623_v51 = vpop.permute.xlu1 %622  ;;  %v611_v13 = vpop.permute.xlu0 %610 }
  0xd1   : > { %v789_v3 = vsel %vm781_vm8, %v776_v29, %v623_v51  ;;  %v783_v4 = vsel %vm781_vm8, %v770_v1, %v611_v13 }
  0xd2   : > { %666 = vrot.lane.b32.xlu1 %v1785_v54, %s1486_s6  ;;  %654 = vrot.lane.b32.xlu0 %v1734_v9, %s1486_s6 }
  0xd4   : > { %v657_v48 = vpop.permute.xlu1 %656  ;;  %v645_v26 = vpop.permute.xlu0 %644 }
  0xd6   : > { %700 = vrot.lane.b32.xlu1 %v1792_v55, %s1487_s11  ;;  %688 = vrot.lane.b32.xlu0 %v1745_v15, %s1487_s11  ;;  %v749_v15 = vsel %vm742_vm5, %v1877_v20, %v1896_v39 }
  0xd7   : > { %v762_v49 = vsel %vm755_vm6, %v749_v15, %v1910_v56 }
  0xd8   : > { %v519_v33 = vpop.permute.xlu1 %518  ;;  %v507_v18 = vpop.permute.xlu0 %506  ;;  %v775_v31 = vsel %vm768_vm7, %v762_v49, %v1932_v17 }
  0xd9   : > { %v752_v61 = vsel %vm742_vm5, %v739_v14, %v519_v33  ;;  %v746_v19 = vsel %vm742_vm5, %v733_v32, %v507_v18  ;;  %v788_v38 = vsel %vm781_vm8, %v775_v31, %v621_v47 }
  0xda   : > { %702 = vrot.lane.b32.xlu1 %v1798_v57, %s1487_s11  ;;  %690 = vrot.lane.b32.xlu0 %v1766_v30, %s1487_s11  ;;  %v743_v57 = vsel %vm742_vm5, %v1880_v24, %v1898_v10  ;;  %v801_v39 = vsel %vm794_vm9, %v788_v38, %v657_v48 }
  0xdb   : > { %v756_v27 = vsel %vm755_vm6, %v743_v57, %v1912_v58 }
  0xdc   : > { %v553_v9 = vpop.permute.xlu1 %552  ;;  %v541_v54 = vpop.permute.xlu0 %540  ;;  %v769_v20 = vsel %vm768_vm7, %v756_v27, %v1934_v52 }
  0xdd   : > { %v1997_v2 = vsel %vm755_vm6, %v751_v36, %v553_v9  ;;  %v2000_v55 = vsel %vm755_vm6, %v745_v12, %v541_v54  ;;  %v782_v24 = vsel %vm781_vm8, %v769_v20, %v609_v8 }
  0xde   : > { %v795_v10 = vsel %vm794_vm9, %v782_v24, %v645_v26 }
  0xe0   : > { %v659_v43 = vpop.permute.xlu1 %658  ;;  %v647_v30 = vpop.permute.xlu0 %646 }
  0xe1   : > { %v802_v5 = vsel %vm794_vm9, %v789_v3, %v659_v43  ;;  %v796_v7 = vsel %vm794_vm9, %v783_v4, %v647_v30 }
  0xe4   : > { %v693_v0 = vpop.permute.xlu1 %692  ;;  %v681_v44 = vpop.permute.xlu0 %680 }
  0xe5   : > { %v808_v45 = vsel %vm807_vm10, %v795_v10, %v681_v44  ;;  %v814_v50 = vsel %vm807_vm10, %v801_v39, %v693_v0 }
  0xe6   : > { %1294 = vmatprep.mubr.msk.f32.mxu0 %vm827_vm11, %v808_v45  ;;  %1303 = vmatprep.mubr.msk.f32.mxu1 %vm827_vm11, %v814_v50 }
  0xe8   : > { %v449_v56 = vpop.permute.xlu1 %448  ;;  %v437_v58 = vpop.permute.xlu0 %436 }
  0xe9   : > { %v727_v60 = vsel %vm716_vm3, %v1777_v41, %v449_v56  ;;  %v721_v22 = vsel %vm716_vm3, %v1780_v42, %v437_v58 }
  0xec   : > { %v555_v59 = vpop.permute.xlu1 %554  ;;  %v543_v62 = vpop.permute.xlu0 %542 }
  0xed   : > { %v765_v6 = vsel %vm755_vm6, %v752_v61, %v555_v59  ;;  %v759_v34 = vsel %vm755_vm6, %v746_v19, %v543_v62 }
  0xf0   : > { %v589_v17 = vpop.permute.xlu1 %588  ;;  %v577_v52 = vpop.permute.xlu0 %576 }
  0xf1   : > { %v777_v15 = vsel %vm768_vm7, %v1997_v2, %v589_v17  ;;  %v771_v57 = vsel %vm768_vm7, %v2000_v55, %v577_v52 }
  0xf4   : > { %v695_v53 = vpop.permute.xlu1 %694  ;;  %v683_v16 = vpop.permute.xlu0 %682 }
  0xf5   : > { %v815_v47 = vsel %vm807_vm10, %v802_v5, %v695_v53  ;;  %v809_v8 = vsel %vm807_vm10, %v796_v7, %v683_v16 }
  0xf6   : > { %1295 = vmatmul.mubr.msk.f32.vlgmr.msra.gmra.mxu0 %vm827_vm11, %v809_v8  ;;  %1304 = vmatmul.mubr.msk.f32.vlgmr.msra.gmra.mxu1 %vm827_vm11, %v815_v47 }
  0xf8   : > { %v2040_v63 = vpop.permute.xlu1 %450  ;;  %v2042_v28 = vpop.permute.xlu0 %438 }
  0xfc   : > { %v485_v37 = vpop.permute.xlu1 %484  ;;  %v473_v40 = vpop.permute.xlu0 %472 }
  0xfd   : > { %v740_v11 = vsel %vm729_vm4, %v727_v60, %v485_v37  ;;  %v734_v35 = vsel %vm729_vm4, %v721_v22, %v473_v40  ;;  %v728_v37 = vsel %vm716_vm3, %v1629_v21, %v2040_v63  ;;  %v722_v40 = vsel %vm716_vm3, %v1636_v25, %v2042_v28 }
 0x100   : > { %v591_v14 = vpop.permute.xlu1 %590  ;;  %v579_v32 = vpop.permute.xlu0 %578 }
 0x101   : > { %v778_v0 = vsel %vm768_vm7, %v765_v6, %v591_v14  ;;  %v772_v44 = vsel %vm768_vm7, %v759_v34, %v579_v32 }
 0x104   : > { %v625_v23 = vpop.permute.xlu1 %624  ;;  %v613_v46 = vpop.permute.xlu0 %612 }
 0x105   : > { %v790_v43 = vsel %vm781_vm8, %v777_v15, %v625_v23  ;;  %v784_v30 = vsel %vm781_vm8, %v771_v57, %v613_v46 }
 0x108   : > { %v487_v36 = vpop.permute.xlu1 %486  ;;  %v475_v12 = vpop.permute.xlu0 %474 }
 0x109   : > { %v735_v32 = vsel %vm729_vm4, %v722_v40, %v475_v12 }
 0x10c   : > { %v521_v51 = vpop.permute.xlu1 %520  ;;  %v509_v13 = vpop.permute.xlu0 %508 }
 0x10d   : > { %v753_v53 = vsel %vm742_vm5, %v740_v11, %v521_v51  ;;  %v747_v16 = vsel %vm742_vm5, %v734_v35, %v509_v13  ;;  %v741_v35 = vsel %vm729_vm4, %v728_v37, %v487_v36 }
 0x110   : > { %v627_v48 = vpop.permute.xlu1 %626  ;;  %v615_v26 = vpop.permute.xlu0 %614 }
 0x111   : > { %v791_v45 = vsel %vm781_vm8, %v778_v0, %v627_v48  ;;  %v785_v50 = vsel %vm781_vm8, %v772_v44, %v615_v26 }
 0x114   : > { %v661_v41 = vpop.permute.xlu1 %660  ;;  %v649_v33 = vpop.permute.xlu0 %648 }
 0x115   : > { %v803_v49 = vsel %vm794_vm9, %v790_v43, %v661_v41  ;;  %v797_v27 = vsel %vm794_vm9, %v784_v30, %v649_v33 }
 0x118   : > { %v523_v18 = vpop.permute.xlu1 %522  ;;  %v511_v42 = vpop.permute.xlu0 %510 }
 0x119   : > { %v754_v51 = vsel %vm742_vm5, %v741_v35, %v523_v18  ;;  %v748_v21 = vsel %vm742_vm5, %v735_v32, %v511_v42 }
 0x11c   : > { %v557_v61 = vpop.permute.xlu1 %556  ;;  %v545_v19 = vpop.permute.xlu0 %544 }
 0x11d   : > { %v766_v60 = vsel %vm755_vm6, %v753_v53, %v557_v61  ;;  %v760_v22 = vsel %vm755_vm6, %v747_v16, %v545_v19 }
 0x120   : > { %v663_v9 = vpop.permute.xlu1 %662  ;;  %v651_v54 = vpop.permute.xlu0 %650 }
 0x121   : > { %v804_v56 = vsel %vm794_vm9, %v791_v45, %v663_v9  ;;  %v798_v58 = vsel %vm794_vm9, %v785_v50, %v651_v54 }
 0x124   : > { %v697_v31 = vpop.permute.xlu1 %696  ;;  %v685_v20 = vpop.permute.xlu0 %684 }
 0x125   : > { %v816_v38 = vsel %vm807_vm10, %v803_v49, %v697_v31  ;;  %v810_v24 = vsel %vm807_vm10, %v797_v27, %v685_v20 }
 0x126   : > { %1297 = vmatprep.mubr.msk.f32.mxu0 %vm827_vm11, %v810_v24  ;;  %1306 = vmatprep.mubr.msk.f32.mxu1 %vm827_vm11, %v816_v38 }
 0x128   : > { %v559_v2 = vpop.permute.xlu1 %558  ;;  %v547_v55 = vpop.permute.xlu0 %546 }
 0x129   : > { %v767_v48 = vsel %vm755_vm6, %v754_v51, %v559_v2  ;;  %v761_v36 = vsel %vm755_vm6, %v748_v21, %v547_v55 }
 0x12c   : > { %v593_v39 = vpop.permute.xlu1 %592  ;;  %v581_v10 = vpop.permute.xlu0 %580 }
 0x12d   : > { %v779_v14 = vsel %vm768_vm7, %v766_v60, %v593_v39  ;;  %v773_v11 = vsel %vm768_vm7, %v760_v22, %v581_v10 }
 0x130   : > { %v699_v59 = vpop.permute.xlu1 %698  ;;  %v687_v62 = vpop.permute.xlu0 %686 }
 0x131   : > { %v817_v17 = vsel %vm807_vm10, %v804_v56, %v699_v59  ;;  %v811_v52 = vsel %vm807_vm10, %v798_v58, %v687_v62 }
 0x132   : > { %1298 = vmatmul.mubr.msk.f32.gmra.mxu0 %vm827_vm11, %v811_v52  ;;  %1307 = vmatmul.mubr.msk.f32.gmra.mxu1 %vm827_vm11, %v817_v17 }
 0x134   : > { %v595_v6 = vpop.permute.xlu1 %594  ;;  %v583_v34 = vpop.permute.xlu0 %582 }
 0x135   : > { %v780_v41 = vsel %vm768_vm7, %v767_v48, %v595_v6  ;;  %v774_v33 = vsel %vm768_vm7, %v761_v36, %v583_v34 }
 0x138   : > { %v629_v29 = vpop.permute.xlu1 %628  ;;  %v617_v1 = vpop.permute.xlu0 %616 }
 0x139   : > { %v792_v23 = vsel %vm781_vm8, %v779_v14, %v629_v29  ;;  %v786_v46 = vsel %vm781_vm8, %v773_v11, %v617_v1 }
 0x13c   : > { %v631_v3 = vpop.permute.xlu1 %630  ;;  %v619_v4 = vpop.permute.xlu0 %618 }
 0x13d   : > { %v793_v18 = vsel %vm781_vm8, %v780_v41, %v631_v3  ;;  %v787_v42 = vsel %vm781_vm8, %v774_v33, %v619_v4 }
 0x140   : > { %v665_v5 = vpop.permute.xlu1 %664  ;;  %v653_v7 = vpop.permute.xlu0 %652 }
 0x141   : > { %v805_v63 = vsel %vm794_vm9, %v792_v23, %v665_v5  ;;  %v799_v25 = vsel %vm794_vm9, %v786_v46, %v653_v7 }
 0x144   : > { %v667_v47 = vpop.permute.xlu1 %666  ;;  %v655_v8 = vpop.permute.xlu0 %654 }
 0x145   : > { %v806_v61 = vsel %vm794_vm9, %v793_v18, %v667_v47  ;;  %v800_v19 = vsel %vm794_vm9, %v787_v42, %v655_v8 }
 0x148   : > { %v701_v28 = vpop.permute.xlu1 %700  ;;  %v689_v13 = vpop.permute.xlu0 %688 }
 0x149   : > { %v818_v12 = vsel %vm807_vm10, %v805_v63, %v701_v28  ;;  %v812_v26 = vsel %vm807_vm10, %v799_v25, %v689_v13 }
 0x14a   : > { %1300 = vmatprep.mubr.msk.f32.mxu0 %vm827_vm11, %v812_v26  ;;  %1309 = vmatprep.mubr.msk.f32.mxu1 %vm827_vm11, %v818_v12 }
 0x14c   : > { %v703_v9 = vpop.permute.xlu1 %702  ;;  %v691_v54 = vpop.permute.xlu0 %690 }
 0x14d   : > { %v819_v15 = vsel %vm807_vm10, %v806_v61, %v703_v9  ;;  %v813_v57 = vsel %vm807_vm10, %v800_v19, %v691_v54 }
 0x14e   : > { %1301 = vmatmul.mubr.msk.f32.gmra.mxu0 %vm827_vm11, %v813_v57  ;;  %1310 = vmatmul.mubr.msk.f32.gmra.mxu1 %vm827_vm11, %v819_v15 }
 0x1b6   : > { %v1296_v43 = vpop.f32.mrf.mxu0  ;;  %v1305_v30 = vpop.f32.mrf.mxu1 }
 0x1b8   : > { %v934_v49 = vpop.f32.mrf.mxu0  ;;  %v964_v27 = vpop.f32.mrf.mxu1 }
 0x1f2   : > { %v1299_v31 = vpop.f32.mrf.mxu0  ;;  %v2108_v20 = vpop.f32.mrf.mxu1 }
 0x1f4   : > { %v944_v38 = vpop.f32.mrf.mxu0  ;;  %v974_v24 = vpop.f32.mrf.mxu1 }
 0x20c   : > { %996 = sbr.rel (%p1262_p11) target bundleno = 538 (0x21a), region = 36 }
 0x20e   : > { %v1302_v2 = vpop.f32.mrf.mxu0  ;;  %v1311_v55 = vpop.f32.mrf.mxu1 }
 0x210   : > { %v954_v39 = vpop.f32.mrf.mxu0  ;;  %v984_v10 = vpop.f32.mrf.mxu1 }
 0x211   : > { %v1263_v0 = vld [vmem:[%s2182_s2] ss:$0 sm:$0xff] }
 0x212   : > { %v1004_v44 = vadd.f32 %v1263_v0, %v934_v49  ;;  %v1005_v45 = vadd.f32 %v1296_v43, %v1263_v0  ;;  %v1006_v50 = vadd.f32 %v1263_v0, %v944_v38  ;;  %v1007_v56 = vadd.f32 %v1299_v31, %v1263_v0 }
 0x213   : > { %v1008_v58 = vadd.f32 %v1263_v0, %v954_v39  ;;  %v1009_v59 = vadd.f32 %v1302_v2, %v1263_v0  ;;  %v1010_v62 = vadd.f32 %v1263_v0, %v964_v27  ;;  %v1011_v17 = vadd.f32 %v1305_v30, %v1263_v0 }
 0x214   : > { %1016 = vst [vmem:[%s1622_s27] sm:$0xff] %v1004_v44  ;;  %1017 = vst [vmem:[%s1622_s27 + $0x8] sm:$0xff] %v1005_v45  ;;  %v1012_v52 = vadd.f32 %v1263_v0, %v974_v24  ;;  %v1013_v6 = vadd.f32 %v2108_v20, %v1263_v0  ;;  %v1014_v34 = vadd.f32 %v1263_v0, %v984_v10 }
 0x215   : > { %1018 = vst [vmem:[%s1622_s27 + $0x10] sm:$0xff] %v1006_v50  ;;  %1019 = vst [vmem:[%s1622_s27 + $0x18] sm:$0xff] %v1007_v56  ;;  %v1015_v29 = vadd.f32 %v1311_v55, %v1263_v0 }
 0x216   : > { %1020 = vst [vmem:[%s1622_s27 + $0x20] sm:$0xff] %v1008_v58  ;;  %1021 = vst [vmem:[%s1622_s27 + $0x28] sm:$0xff] %v1009_v59 }
 0x217   : > { %1022 = vst [vmem:[%s1622_s27 + $0x30] sm:$0xff] %v1010_v62  ;;  %1023 = vst [vmem:[%s1622_s27 + $0x38] sm:$0xff] %v1011_v17 }
 0x218   : > { %1024 = vst [vmem:[%s1622_s27 + $0x40] sm:$0xff] %v1012_v52  ;;  %1025 = vst [vmem:[%s1622_s27 + $0x48] sm:$0xff] %v1013_v6 }
 0x219   : > { %1026 = vst [vmem:[%s1622_s27 + $0x50] sm:$0xff] %v1014_v34  ;;  %1027 = vst [vmem:[%s1622_s27 + $0x58] sm:$0xff] %v1015_v29 }
 0x21a PF: > { %p1264_p12 = scmp.le.s32.totalorder %s1446_s12, 0 }
 0x21c   : > { %1031 = sbr.rel (%p1264_p12) target bundleno = 554 (0x22a), region = 40 }
 0x221   : > { %v1032_v1 = vld [vmem:[%s1622_s27] sm:$0xff]  ;;  %v1033_v3 = vld [vmem:[%s1622_s27 + $0x8] sm:$0xff]  ;;  %v1034_v4 = vld [vmem:[%s1622_s27 + $0x10] sm:$0xff] }
 0x222   : > { %v1044_v5 = vadd.f32 %v1032_v1, %v934_v49  ;;  %v1045_v7 = vadd.f32 %v1296_v43, %v1033_v3  ;;  %v1046_v53 = vadd.f32 %v1034_v4, %v944_v38  ;;  %v1035_v16 = vld [vmem:[%s1622_s27 + $0x18] sm:$0xff]  ;;  %v1036_v47 = vld [vmem:[%s1622_s27 + $0x20] sm:$0xff]  ;;  %v1037_v8 = vld [vmem:[%s1622_s27 + $0x28] sm:$0xff] }
 0x223   : > { %v1047_v60 = vadd.f32 %v1299_v31, %v1035_v16  ;;  %v1048_v22 = vadd.f32 %v1036_v47, %v954_v39  ;;  %v1049_v37 = vadd.f32 %v1302_v2, %v1037_v8  ;;  %v1038_v40 = vld [vmem:[%s1622_s27 + $0x30] sm:$0xff]  ;;  %v1039_v14 = vld [vmem:[%s1622_s27 + $0x38] sm:$0xff]  ;;  %v1040_v11 = vld [vmem:[%s1622_s27 + $0x40] sm:$0xff] }
 0x224   : > { %1056 = vst [vmem:[%s1622_s27] sm:$0xff] %v1044_v5  ;;  %1057 = vst [vmem:[%s1622_s27 + $0x8] sm:$0xff] %v1045_v7  ;;  %v1050_v35 = vadd.f32 %v1038_v40, %v964_v27  ;;  %v1051_v32 = vadd.f32 %v1305_v30, %v1039_v14  ;;  %v1052_v23 = vadd.f32 %v1040_v11, %v974_v24  ;;  %v1041_v46 = vld [vmem:[%s1622_s27 + $0x48] sm:$0xff]  ;;  %v1042_v51 = vld [vmem:[%s1622_s27 + $0x50] sm:$0xff] }
 0x225   : > { %1058 = vst [vmem:[%s1622_s27 + $0x10] sm:$0xff] %v1046_v53  ;;  %v1043_v21 = vld [vmem:[%s1622_s27 + $0x58] sm:$0xff]  ;;  %1059 = vst [vmem:[%s1622_s27 + $0x18] sm:$0xff] %v1047_v60  ;;  %v1053_v63 = vadd.f32 %v2108_v20, %v1041_v46  ;;  %v1054_v25 = vadd.f32 %v1042_v51, %v984_v10 }
 0x226   : > { %1060 = vst [vmem:[%s1622_s27 + $0x20] sm:$0xff] %v1048_v22  ;;  %1061 = vst [vmem:[%s1622_s27 + $0x28] sm:$0xff] %v1049_v37  ;;  %v1055_v28 = vadd.f32 %v1311_v55, %v1043_v21 }
 0x227   : > { %1062 = vst [vmem:[%s1622_s27 + $0x30] sm:$0xff] %v1050_v35  ;;  %1063 = vst [vmem:[%s1622_s27 + $0x38] sm:$0xff] %v1051_v32 }
 0x228   : > { %1064 = vst [vmem:[%s1622_s27 + $0x40] sm:$0xff] %v1052_v23  ;;  %1065 = vst [vmem:[%s1622_s27 + $0x48] sm:$0xff] %v1053_v63 }
 0x229   : > { %1066 = vst [vmem:[%s1622_s27 + $0x50] sm:$0xff] %v1054_v25  ;;  %1067 = vst [vmem:[%s1622_s27 + $0x58] sm:$0xff] %v1055_v28 }
 0x22a PF: > { %s13_s20 = sadd.s32 1, %s1478_s20   ;;  %s2184_s12 = smov %s1462_s16 }
 0x22b   : > { %p10_p13 = scmp.ge.s32.totalorder %s13_s20, 110   ;;  %s2185_s13 = smov %s1466_s17 }
 0x22c   : > { %s2186_s14 = smov %s1470_s18  ;;  %s2187_s15 = smov %s1474_s19 }
 0x22d   : > { %s2188_s16 = smov %s2193_s21  ;;  %s2189_s17 = smov %s2197_s22 }
 0x22e   : > { %s2190_s18 = smov %s2201_s23  ;;  %s2191_s19 = smov %s2205_s24 }
 0x22f   :  { %12 = sbr.rel (!%p10_p13) target bundleno = 5 (0x5), region = 77 }

</bundles_post_ra>
